<compile_context>
chip_gen: v7x
topology: tpu7x:2x2x1
jax: 0.10.0
libtpu: 0.0.40
codegen_flags: <defaults>
</compile_context>

<pallas_src>
from dataclasses import dataclass

import numpy as np
import jax
import jax.numpy as jnp
from jax import lax
from jax.experimental import pallas as pl
from jax.experimental.pallas import tpu as pltpu


@dataclass
class MandoFanBeamConfig:
    sgmHeight: int = 8
    sgmWidth: int = 16
    views: int = 8
    detEltCount: int = 16
    detEltSize: float = 1.0
    detOffCenter: float = 0.0
    sid: float = 50.0
    sdd: float = 100.0
    startAngle: float = 0.0          # degrees
    totalScanAngle: float = 360.0    # degrees
    imgDim: int = 16
    pixelSize: float = 1.0
    imgRot: float = 0.0              # degrees
    imgXCenter: float = 0.0
    imgYCenter: float = 0.0
    reconKernelEnum: int = 0         # 0 == Ram-Lak ramp
    reconKernelParam: float = 1.0
    fovCrop: bool = False
    oversampleSize: int = 1
    fpjStepSize: float = 0.25
    # TODO(synk): pmatrix / non-uniform geometry options are unsupported.
    pmatrixFlag: bool = False
    nonuniformSID: bool = False
    nonuniformSDD: bool = False
    nonuniformScanAngle: bool = False
    nonuniformOffCenter: bool = False


def _ramp_filter_matrix(W: int, d: float, param: float) -> jax.Array:
    """Toeplitz matrix H with H[j, k] = ramp(k - j) * d, so filtered = sino @ H."""
    n = np.arange(-(W - 1), W)
    h = np.zeros(n.shape, dtype=np.float64)
    h[n == 0] = 1.0 / (4.0 * d * d)
    odd = (n % 2) != 0
    h[odd] = -1.0 / (np.pi ** 2 * (n[odd].astype(np.float64) ** 2) * d * d)
    # TODO(synk): only the Ram-Lak ramp kernel (reconKernelEnum == 0) is
    # implemented; reconKernelParam is applied as a global scale.
    k = np.arange(W)[:, None]
    j = np.arange(W)[None, :]
    H = h[(j - k) + (W - 1)] * d * param
    return jnp.asarray(H, dtype=jnp.float32)


def _pick_pixel_tile(p_total: int, cap: int = 2048) -> int:
    """Largest pixel-tile (lane axis) <= cap that divides p_total, multiple of 128."""
    if p_total <= cap:
        return p_total
    t = (cap // 128) * 128
    while t >= 128:
        if p_total % t == 0:
            return t
        t -= 128
    return p_total


def _make_bp_kernel(cfg: MandoFanBeamConfig, V: int, W: int, B: int, P: int):
    sid = float(cfg.sid)
    sdd = float(cfg.sdd)
    det_elt = float(cfg.detEltSize)
    det_off = float(cfg.detOffCenter)
    inv_det = 1.0 / det_elt
    d_beta = float(np.radians(cfg.totalScanAngle)) / V
    fov_crop = bool(cfg.fovCrop)
    fov_r = (W * det_elt * 0.5) * sid / sdd

    def kernel(cos_ref, sin_ref, px_ref, py_ref, sfilt_ref, out_ref):
        # View-invariant per-pixel geometry, loaded once per tile (pixels on lanes).
        px = px_ref[...]                                    # (1, P)
        py = py_ref[...]                                    # (1, P)
        jj = lax.broadcasted_iota(jnp.int32, (W, P), 0)     # detector index on sublanes

        def body(v, acc):
            cb = cos_ref[v]
            sb = sin_ref[v]
            # Distance from source along the central ray; EUP reciprocal is
            # reused for both the detector coordinate and the (sid/L)^2 weight.
            L = jnp.maximum(sid - (px * cb + py * sb), jnp.float32(1e-6))
            inv_l = pl.reciprocal(L, approx=True)           # EUP slot (~free)
            tlat = py * cb - px * sb                        # lateral offset
            didx = (tlat * sdd * inv_l - det_off) * inv_det + (W - 1) * 0.5
            i0f = jnp.floor(didx)
            frac = didx - i0f
            i0 = i0f.astype(jnp.int32)                      # (1, P)

            # Linear-interpolation weights as a (W, P) one-hot-ish matrix
            # (detector on sublanes, pixels on lanes).
            # TODO(synk): boundary rays (i0 == -1 / i0 == W-1) still deposit
            # their fractional weight at the edge element; verify vs CUDA.
            w0 = jnp.where((jj == i0) & (i0 >= 0), 1.0 - frac, 0.0)
            w1 = jnp.where((jj == i0 + 1) & (i0 + 1 <= W - 1), frac, 0.0)
            bp_w = (sid * inv_l) * (sid * inv_l) * d_beta   # (1, P)
            wmat = (w0 + w1) * bp_w                         # (W, P)

            # MXU contraction over the detector axis, amortized over the batch:
            # (B, W) @ (W, P) -> (B, P); pixels fill the output lane dimension.
            proj = jnp.dot(sfilt_ref[v], wmat,
                           preferred_element_type=jnp.float32)
            return acc + proj

        acc = jnp.zeros((B, P), jnp.float32)
        if V <= 32:
            # Fully unrolled view loop — visible to the LLO scheduler.
            for v in range(V):
                acc = body(v, acc)
        else:
            acc = lax.fori_loop(0, V, body, acc)

        if fov_crop:
            # Correctness fix: crop circle is centered at the iso-center in
            # world coordinates (px, py), not image-local coordinates.
            r2 = px * px + py * py
            acc = jnp.where(r2 <= fov_r * fov_r, acc, 0.0)

        out_ref[...] = acc.astype(out_ref.dtype)

    return kernel


def mando_fanbeam_fbp(x: jax.Array, cfg: MandoFanBeamConfig) -> jax.Array:
    """Forward pass of MandoFanbeamFbpLayer.  x: (B, views, sgmWidth) float32."""
    x = jnp.asarray(x, jnp.float32)
    B, V, W = x.shape
    assert V == cfg.views and W == cfg.sgmWidth
    N = int(cfg.imgDim)
    P_total = N * N
    P = _pick_pixel_tile(P_total)
    assert P_total % P == 0
    grid = (P_total // P,)

    det_elt = float(cfg.detEltSize)
    det_off = float(cfg.detOffCenter)
    sid = float(cfg.sid)
    sdd = float(cfg.sdd)
    pix = float(cfg.pixelSize)
    img_rot = float(np.radians(cfg.imgRot))
    cr, sr = float(np.cos(img_rot)), float(np.sin(img_rot))

    # Per-view source-angle tables (SMEM scalars inside the kernel).
    betas = (np.radians(cfg.startAngle)
             + np.arange(V, dtype=np.float64) * np.radians(cfg.totalScanAngle) / V)
    cos_tab = jnp.asarray(np.cos(betas), jnp.float32)
    sin_tab = jnp.asarray(np.sin(betas), jnp.float32)

    # View-invariant world coordinates of every image pixel (hoisted geometry),
    # flattened row-major so out.reshape(B, N, N) is the image directly.
    rr, cc = np.meshgrid(np.arange(N), np.arange(N), indexing="ij")
    x0 = (cc - (N - 1) * 0.5) * pix
    y0 = ((N - 1) * 0.5 - rr) * pix
    px_np = (x0 * cr - y0 * sr + float(cfg.imgXCenter)).reshape(1, P_total)
    py_np = (x0 * sr + y0 * cr + float(cfg.imgYCenter)).reshape(1, P_total)
    px = jnp.asarray(px_np, jnp.float32)
    py = jnp.asarray(py_np, jnp.float32)

    # Fan-beam cosine pre-weighting + ramp filtering, hoisted out of the kernel
    # (ordinary XLA matmul on the MXU).  Result layout (V, B, W) so each view
    # is a (B, W) left operand of the in-kernel back-projection matmul.
    u = (np.arange(W) - (W - 1) * 0.5) * det_elt + det_off
    cosw = jnp.asarray(sdd / np.sqrt(sdd * sdd + u * u), jnp.float32)
    H = _ramp_filter_matrix(W, det_elt, float(cfg.reconKernelParam))
    sfilt = jnp.matmul(x * cosw[None, None, :], H)          # (B, V, W) f32
    sfilt_t = jnp.transpose(sfilt, (1, 0, 2))               # (V, B, W)

    kernel = _make_bp_kernel(cfg, V, W, B, P)

    out_flat = pl.pallas_call(
        kernel,
        out_shape=jax.ShapeDtypeStruct((B, P_total), jnp.float32),
        grid=grid,
        in_specs=[
            pl.BlockSpec(memory_space=pltpu.MemorySpace.SMEM),   # cos(beta) table
            pl.BlockSpec(memory_space=pltpu.MemorySpace.SMEM),   # sin(beta) table
            pl.BlockSpec((1, P), lambda t: (0, t)),              # pixel world x
            pl.BlockSpec((1, P), lambda t: (0, t)),              # pixel world y
            # Filtered sinogram, resident across pixel tiles.
            # TODO(synk): at production sizes (V~720, W~900) stream this in
            # view-blocks instead of holding the full (V, B, W) block in VMEM.
            pl.BlockSpec((V, B, W), lambda t: (0, 0, 0)),
        ],
        out_specs=pl.BlockSpec((B, P), lambda t: (0, t)),        # lane-dense output
        compiler_params=pltpu.CompilerParams(
            dimension_semantics=("parallel",)),
    )(cos_tab, sin_tab, px, py, sfilt_t)

    return out_flat.reshape(B, N, N).astype(x.dtype)


if __name__ == "__main__":
    cfg = MandoFanBeamConfig(sgmHeight=8, sgmWidth=16, views=8, detEltCount=16,
                             imgDim=16, pixelSize=1.0, sid=50.0, sdd=100.0)
    key = jax.random.PRNGKey(0)
    x = jax.random.normal(key, (2, cfg.views, cfg.sgmWidth), dtype=jnp.float32)

    img = mando_fanbeam_fbp(x, cfg)
    img = jax.block_until_ready(img)
    assert img.shape == (2, cfg.imgDim, cfg.imgDim), img.shape
    assert bool(jnp.all(jnp.isfinite(img)))
    print("KERNEL_OK")
</pallas_src>

<mosaic_0001>
module attributes {stable_mosaic.version = 11 : i64} {
  func.func @kernel(%arg0: i32, %arg1: memref<8xf32, #tpu.memory_space<smem>>, %arg2: memref<8xf32, #tpu.memory_space<smem>>, %arg3: memref<1x256xf32, #tpu.memory_space<vmem>>, %arg4: memref<1x256xf32, #tpu.memory_space<vmem>>, %arg5: memref<8x2x16xf32, #tpu.memory_space<vmem>>, %arg6: memref<2x256xf32, #tpu.memory_space<vmem>>) attributes {dimension_semantics = [#tpu.dimension_semantics<parallel>], iteration_bounds = array<i64: 1>, scalar_prefetch = 0 : i64, scratch_operands = 0 : i64, tpu.core_type = #tpu.core_type<tc>, window_params = [{transform_indices = @transform_0, window_bounds = array<i64: 8>}, {transform_indices = @transform_1, window_bounds = array<i64: 8>}, {transform_indices = @transform_2, window_bounds = array<i64: 1, 256>}, {transform_indices = @transform_3, window_bounds = array<i64: 1, 256>}, {pipeline_mode = #tpu.pipeline_mode<synchronous>, transform_indices = @transform_4, window_bounds = array<i64: 8, 2, 16>}, {transform_indices = @transform_5, window_bounds = array<i64: 2, 256>}]} {
    %c0 = arith.constant 0 : index
    %c0_0 = arith.constant 0 : index
    %0 = vector.load %arg3[%c0, %c0_0] : memref<1x256xf32, #tpu.memory_space<vmem>>, vector<1x256xf32>
    %c0_1 = arith.constant 0 : index
    %c0_2 = arith.constant 0 : index
    %1 = vector.load %arg4[%c0_1, %c0_2] : memref<1x256xf32, #tpu.memory_space<vmem>>, vector<1x256xf32>
    %2 = tpu.iota {dimensions = array<i32: 0>} : vector<16x256xi32>
    %cst = arith.constant 0.000000e+00 : f32
    %3 = vector.broadcast %cst : f32 to vector<2x256xf32>
    %c0_3 = arith.constant 0 : index
    %4 = memref.load %arg1[%c0_3] : memref<8xf32, #tpu.memory_space<smem>>
    %c0_4 = arith.constant 0 : index
    %5 = memref.load %arg2[%c0_4] : memref<8xf32, #tpu.memory_space<smem>>
    %6 = vector.broadcast %4 : f32 to vector<1x256xf32>
    %7 = arith.mulf %0, %6 : vector<1x256xf32>
    %8 = vector.broadcast %5 : f32 to vector<1x256xf32>
    %9 = arith.mulf %1, %8 : vector<1x256xf32>
    %10 = arith.addf %7, %9 : vector<1x256xf32>
    %cst_5 = arith.constant 5.000000e+01 : f32
    %11 = vector.broadcast %cst_5 : f32 to vector<1x256xf32>
    %12 = arith.subf %11, %10 : vector<1x256xf32>
    %cst_6 = arith.constant 9.99999997E-7 : f32
    %13 = vector.broadcast %cst_6 : f32 to vector<1x256xf32>
    %14 = arith.maximumf %12, %13 : vector<1x256xf32>
    %15 = tpu.reciprocal %14 {approx = true} : vector<1x256xf32> -> vector<1x256xf32>
    %16 = vector.broadcast %4 : f32 to vector<1x256xf32>
    %17 = arith.mulf %1, %16 : vector<1x256xf32>
    %18 = vector.broadcast %5 : f32 to vector<1x256xf32>
    %19 = arith.mulf %0, %18 : vector<1x256xf32>
    %20 = arith.subf %17, %19 : vector<1x256xf32>
    %cst_7 = arith.constant 1.000000e+02 : f32
    %21 = vector.broadcast %cst_7 : f32 to vector<1x256xf32>
    %22 = arith.mulf %20, %21 : vector<1x256xf32>
    %23 = arith.mulf %22, %15 : vector<1x256xf32>
    %cst_8 = arith.constant 0.000000e+00 : f32
    %24 = vector.broadcast %cst_8 : f32 to vector<1x256xf32>
    %25 = arith.subf %23, %24 : vector<1x256xf32>
    %cst_9 = arith.constant 1.000000e+00 : f32
    %26 = vector.broadcast %cst_9 : f32 to vector<1x256xf32>
    %27 = arith.mulf %25, %26 : vector<1x256xf32>
    %cst_10 = arith.constant 7.500000e+00 : f32
    %28 = vector.broadcast %cst_10 : f32 to vector<1x256xf32>
    %29 = arith.addf %27, %28 : vector<1x256xf32>
    %30 = math.floor %29 : vector<1x256xf32>
    %31 = arith.subf %29, %30 : vector<1x256xf32>
    %32 = arith.fptosi %30 : vector<1x256xf32> to vector<1x256xi32>
    %33 = vector.broadcast %32 : vector<1x256xi32> to vector<16x256xi32>
    %34 = arith.cmpi eq, %2, %33 : vector<16x256xi32>
    %c0_i32 = arith.constant 0 : i32
    %35 = vector.broadcast %c0_i32 : i32 to vector<1x256xi32>
    %36 = arith.cmpi sge, %32, %35 : vector<1x256xi32>
    %37 = vector.broadcast %36 : vector<1x256xi1> to vector<16x256xi1>
    %38 = arith.andi %34, %37 : vector<16x256xi1>
    %cst_11 = arith.constant 1.000000e+00 : f32
    %39 = vector.broadcast %cst_11 : f32 to vector<1x256xf32>
    %40 = arith.subf %39, %31 : vector<1x256xf32>
    %cst_12 = arith.constant 0.000000e+00 : f32
    %41 = vector.shape_cast %40 : vector<1x256xf32> to vector<1x256xf32>
    %42 = vector.broadcast %41 : vector<1x256xf32> to vector<16x256xf32>
    %43 = vector.broadcast %cst_12 : f32 to vector<16x256xf32>
    %44 = arith.select %38, %42, %43 : vector<16x256xi1>, vector<16x256xf32>
    %c1_i32 = arith.constant 1 : i32
    %45 = vector.broadcast %c1_i32 : i32 to vector<1x256xi32>
    %46 = arith.addi %32, %45 : vector<1x256xi32>
    %47 = vector.broadcast %46 : vector<1x256xi32> to vector<16x256xi32>
    %48 = arith.cmpi eq, %2, %47 : vector<16x256xi32>
    %c1_i32_13 = arith.constant 1 : i32
    %49 = vector.broadcast %c1_i32_13 : i32 to vector<1x256xi32>
    %50 = arith.addi %32, %49 : vector<1x256xi32>
    %c15_i32 = arith.constant 15 : i32
    %51 = vector.broadcast %c15_i32 : i32 to vector<1x256xi32>
    %52 = arith.cmpi sle, %50, %51 : vector<1x256xi32>
    %53 = vector.broadcast %52 : vector<1x256xi1> to vector<16x256xi1>
    %54 = arith.andi %48, %53 : vector<16x256xi1>
    %cst_14 = arith.constant 0.000000e+00 : f32
    %55 = vector.shape_cast %31 : vector<1x256xf32> to vector<1x256xf32>
    %56 = vector.broadcast %55 : vector<1x256xf32> to vector<16x256xf32>
    %57 = vector.broadcast %cst_14 : f32 to vector<16x256xf32>
    %58 = arith.select %54, %56, %57 : vector<16x256xi1>, vector<16x256xf32>
    %cst_15 = arith.constant 5.000000e+01 : f32
    %59 = vector.broadcast %cst_15 : f32 to vector<1x256xf32>
    %60 = arith.mulf %59, %15 : vector<1x256xf32>
    %cst_16 = arith.constant 5.000000e+01 : f32
    %61 = vector.broadcast %cst_16 : f32 to vector<1x256xf32>
    %62 = arith.mulf %61, %15 : vector<1x256xf32>
    %63 = arith.mulf %60, %62 : vector<1x256xf32>
    %cst_17 = arith.constant 0.785398185 : f32
    %64 = vector.broadcast %cst_17 : f32 to vector<1x256xf32>
    %65 = arith.mulf %63, %64 : vector<1x256xf32>
    %66 = arith.addf %44, %58 : vector<16x256xf32>
    %67 = vector.broadcast %65 : vector<1x256xf32> to vector<16x256xf32>
    %68 = arith.mulf %66, %67 : vector<16x256xf32>
    %c0_18 = arith.constant 0 : index
    %c0_19 = arith.constant 0 : index
    %c0_20 = arith.constant 0 : index
    %69 = vector.load %arg5[%c0_18, %c0_19, %c0_20] : memref<8x2x16xf32, #tpu.memory_space<vmem>>, vector<1x2x16xf32>
    %70 = vector.shape_cast %69 : vector<1x2x16xf32> to vector<2x16xf32>
    %cst_21 = arith.constant dense<0.000000e+00> : vector<2x256xf32>
    %71 = tpu.matmul %70, %68, %cst_21 {dimension_numbers = #tpu.dot_dimension_numbers<[1], [0], [0], [1], [0, 0, 1, 1], [], []>} : vector<2x16xf32>, vector<16x256xf32>, vector<2x256xf32> -> vector<2x256xf32>
    %72 = arith.addf %3, %71 : vector<2x256xf32>
    %c1 = arith.constant 1 : index
    %73 = memref.load %arg1[%c1] : memref<8xf32, #tpu.memory_space<smem>>
    %c1_22 = arith.constant 1 : index
    %74 = memref.load %arg2[%c1_22] : memref<8xf32, #tpu.memory_space<smem>>
    %75 = vector.broadcast %73 : f32 to vector<1x256xf32>
    %76 = arith.mulf %0, %75 : vector<1x256xf32>
    %77 = vector.broadcast %74 : f32 to vector<1x256xf32>
    %78 = arith.mulf %1, %77 : vector<1x256xf32>
    %79 = arith.addf %76, %78 : vector<1x256xf32>
    %cst_23 = arith.constant 5.000000e+01 : f32
    %80 = vector.broadcast %cst_23 : f32 to vector<1x256xf32>
    %81 = arith.subf %80, %79 : vector<1x256xf32>
    %cst_24 = arith.constant 9.99999997E-7 : f32
    %82 = vector.broadcast %cst_24 : f32 to vector<1x256xf32>
    %83 = arith.maximumf %81, %82 : vector<1x256xf32>
    %84 = tpu.reciprocal %83 {approx = true} : vector<1x256xf32> -> vector<1x256xf32>
    %85 = vector.broadcast %73 : f32 to vector<1x256xf32>
    %86 = arith.mulf %1, %85 : vector<1x256xf32>
    %87 = vector.broadcast %74 : f32 to vector<1x256xf32>
    %88 = arith.mulf %0, %87 : vector<1x256xf32>
    %89 = arith.subf %86, %88 : vector<1x256xf32>
    %cst_25 = arith.constant 1.000000e+02 : f32
    %90 = vector.broadcast %cst_25 : f32 to vector<1x256xf32>
    %91 = arith.mulf %89, %90 : vector<1x256xf32>
    %92 = arith.mulf %91, %84 : vector<1x256xf32>
    %cst_26 = arith.constant 0.000000e+00 : f32
    %93 = vector.broadcast %cst_26 : f32 to vector<1x256xf32>
    %94 = arith.subf %92, %93 : vector<1x256xf32>
    %cst_27 = arith.constant 1.000000e+00 : f32
    %95 = vector.broadcast %cst_27 : f32 to vector<1x256xf32>
    %96 = arith.mulf %94, %95 : vector<1x256xf32>
    %cst_28 = arith.constant 7.500000e+00 : f32
    %97 = vector.broadcast %cst_28 : f32 to vector<1x256xf32>
    %98 = arith.addf %96, %97 : vector<1x256xf32>
    %99 = math.floor %98 : vector<1x256xf32>
    %100 = arith.subf %98, %99 : vector<1x256xf32>
    %101 = arith.fptosi %99 : vector<1x256xf32> to vector<1x256xi32>
    %102 = vector.broadcast %101 : vector<1x256xi32> to vector<16x256xi32>
    %103 = arith.cmpi eq, %2, %102 : vector<16x256xi32>
    %c0_i32_29 = arith.constant 0 : i32
    %104 = vector.broadcast %c0_i32_29 : i32 to vector<1x256xi32>
    %105 = arith.cmpi sge, %101, %104 : vector<1x256xi32>
    %106 = vector.broadcast %105 : vector<1x256xi1> to vector<16x256xi1>
    %107 = arith.andi %103, %106 : vector<16x256xi1>
    %cst_30 = arith.constant 1.000000e+00 : f32
    %108 = vector.broadcast %cst_30 : f32 to vector<1x256xf32>
    %109 = arith.subf %108, %100 : vector<1x256xf32>
    %cst_31 = arith.constant 0.000000e+00 : f32
    %110 = vector.shape_cast %109 : vector<1x256xf32> to vector<1x256xf32>
    %111 = vector.broadcast %110 : vector<1x256xf32> to vector<16x256xf32>
    %112 = vector.broadcast %cst_31 : f32 to vector<16x256xf32>
    %113 = arith.select %107, %111, %112 : vector<16x256xi1>, vector<16x256xf32>
    %c1_i32_32 = arith.constant 1 : i32
    %114 = vector.broadcast %c1_i32_32 : i32 to vector<1x256xi32>
    %115 = arith.addi %101, %114 : vector<1x256xi32>
    %116 = vector.broadcast %115 : vector<1x256xi32> to vector<16x256xi32>
    %117 = arith.cmpi eq, %2, %116 : vector<16x256xi32>
    %c1_i32_33 = arith.constant 1 : i32
    %118 = vector.broadcast %c1_i32_33 : i32 to vector<1x256xi32>
    %119 = arith.addi %101, %118 : vector<1x256xi32>
    %c15_i32_34 = arith.constant 15 : i32
    %120 = vector.broadcast %c15_i32_34 : i32 to vector<1x256xi32>
    %121 = arith.cmpi sle, %119, %120 : vector<1x256xi32>
    %122 = vector.broadcast %121 : vector<1x256xi1> to vector<16x256xi1>
    %123 = arith.andi %117, %122 : vector<16x256xi1>
    %cst_35 = arith.constant 0.000000e+00 : f32
    %124 = vector.shape_cast %100 : vector<1x256xf32> to vector<1x256xf32>
    %125 = vector.broadcast %124 : vector<1x256xf32> to vector<16x256xf32>
    %126 = vector.broadcast %cst_35 : f32 to vector<16x256xf32>
    %127 = arith.select %123, %125, %126 : vector<16x256xi1>, vector<16x256xf32>
    %cst_36 = arith.constant 5.000000e+01 : f32
    %128 = vector.broadcast %cst_36 : f32 to vector<1x256xf32>
    %129 = arith.mulf %128, %84 : vector<1x256xf32>
    %cst_37 = arith.constant 5.000000e+01 : f32
    %130 = vector.broadcast %cst_37 : f32 to vector<1x256xf32>
    %131 = arith.mulf %130, %84 : vector<1x256xf32>
    %132 = arith.mulf %129, %131 : vector<1x256xf32>
    %cst_38 = arith.constant 0.785398185 : f32
    %133 = vector.broadcast %cst_38 : f32 to vector<1x256xf32>
    %134 = arith.mulf %132, %133 : vector<1x256xf32>
    %135 = arith.addf %113, %127 : vector<16x256xf32>
    %136 = vector.broadcast %134 : vector<1x256xf32> to vector<16x256xf32>
    %137 = arith.mulf %135, %136 : vector<16x256xf32>
    %c1_39 = arith.constant 1 : index
    %c0_40 = arith.constant 0 : index
    %c0_41 = arith.constant 0 : index
    %138 = vector.load %arg5[%c1_39, %c0_40, %c0_41] : memref<8x2x16xf32, #tpu.memory_space<vmem>>, vector<1x2x16xf32>
    %139 = vector.shape_cast %138 : vector<1x2x16xf32> to vector<2x16xf32>
    %cst_42 = arith.constant dense<0.000000e+00> : vector<2x256xf32>
    %140 = tpu.matmul %139, %137, %cst_42 {dimension_numbers = #tpu.dot_dimension_numbers<[1], [0], [0], [1], [0, 0, 1, 1], [], []>} : vector<2x16xf32>, vector<16x256xf32>, vector<2x256xf32> -> vector<2x256xf32>
    %141 = arith.addf %72, %140 : vector<2x256xf32>
    %c2 = arith.constant 2 : index
    %142 = memref.load %arg1[%c2] : memref<8xf32, #tpu.memory_space<smem>>
    %c2_43 = arith.constant 2 : index
    %143 = memref.load %arg2[%c2_43] : memref<8xf32, #tpu.memory_space<smem>>
    %144 = vector.broadcast %142 : f32 to vector<1x256xf32>
    %145 = arith.mulf %0, %144 : vector<1x256xf32>
    %146 = vector.broadcast %143 : f32 to vector<1x256xf32>
    %147 = arith.mulf %1, %146 : vector<1x256xf32>
    %148 = arith.addf %145, %147 : vector<1x256xf32>
    %cst_44 = arith.constant 5.000000e+01 : f32
    %149 = vector.broadcast %cst_44 : f32 to vector<1x256xf32>
    %150 = arith.subf %149, %148 : vector<1x256xf32>
    %cst_45 = arith.constant 9.99999997E-7 : f32
    %151 = vector.broadcast %cst_45 : f32 to vector<1x256xf32>
    %152 = arith.maximumf %150, %151 : vector<1x256xf32>
    %153 = tpu.reciprocal %152 {approx = true} : vector<1x256xf32> -> vector<1x256xf32>
    %154 = vector.broadcast %142 : f32 to vector<1x256xf32>
    %155 = arith.mulf %1, %154 : vector<1x256xf32>
    %156 = vector.broadcast %143 : f32 to vector<1x256xf32>
    %157 = arith.mulf %0, %156 : vector<1x256xf32>
    %158 = arith.subf %155, %157 : vector<1x256xf32>
    %cst_46 = arith.constant 1.000000e+02 : f32
    %159 = vector.broadcast %cst_46 : f32 to vector<1x256xf32>
    %160 = arith.mulf %158, %159 : vector<1x256xf32>
    %161 = arith.mulf %160, %153 : vector<1x256xf32>
    %cst_47 = arith.constant 0.000000e+00 : f32
    %162 = vector.broadcast %cst_47 : f32 to vector<1x256xf32>
    %163 = arith.subf %161, %162 : vector<1x256xf32>
    %cst_48 = arith.constant 1.000000e+00 : f32
    %164 = vector.broadcast %cst_48 : f32 to vector<1x256xf32>
    %165 = arith.mulf %163, %164 : vector<1x256xf32>
    %cst_49 = arith.constant 7.500000e+00 : f32
    %166 = vector.broadcast %cst_49 : f32 to vector<1x256xf32>
    %167 = arith.addf %165, %166 : vector<1x256xf32>
    %168 = math.floor %167 : vector<1x256xf32>
    %169 = arith.subf %167, %168 : vector<1x256xf32>
    %170 = arith.fptosi %168 : vector<1x256xf32> to vector<1x256xi32>
    %171 = vector.broadcast %170 : vector<1x256xi32> to vector<16x256xi32>
    %172 = arith.cmpi eq, %2, %171 : vector<16x256xi32>
    %c0_i32_50 = arith.constant 0 : i32
    %173 = vector.broadcast %c0_i32_50 : i32 to vector<1x256xi32>
    %174 = arith.cmpi sge, %170, %173 : vector<1x256xi32>
    %175 = vector.broadcast %174 : vector<1x256xi1> to vector<16x256xi1>
    %176 = arith.andi %172, %175 : vector<16x256xi1>
    %cst_51 = arith.constant 1.000000e+00 : f32
    %177 = vector.broadcast %cst_51 : f32 to vector<1x256xf32>
    %178 = arith.subf %177, %169 : vector<1x256xf32>
    %cst_52 = arith.constant 0.000000e+00 : f32
    %179 = vector.shape_cast %178 : vector<1x256xf32> to vector<1x256xf32>
    %180 = vector.broadcast %179 : vector<1x256xf32> to vector<16x256xf32>
    %181 = vector.broadcast %cst_52 : f32 to vector<16x256xf32>
    %182 = arith.select %176, %180, %181 : vector<16x256xi1>, vector<16x256xf32>
    %c1_i32_53 = arith.constant 1 : i32
    %183 = vector.broadcast %c1_i32_53 : i32 to vector<1x256xi32>
    %184 = arith.addi %170, %183 : vector<1x256xi32>
    %185 = vector.broadcast %184 : vector<1x256xi32> to vector<16x256xi32>
    %186 = arith.cmpi eq, %2, %185 : vector<16x256xi32>
    %c1_i32_54 = arith.constant 1 : i32
    %187 = vector.broadcast %c1_i32_54 : i32 to vector<1x256xi32>
    %188 = arith.addi %170, %187 : vector<1x256xi32>
    %c15_i32_55 = arith.constant 15 : i32
    %189 = vector.broadcast %c15_i32_55 : i32 to vector<1x256xi32>
    %190 = arith.cmpi sle, %188, %189 : vector<1x256xi32>
    %191 = vector.broadcast %190 : vector<1x256xi1> to vector<16x256xi1>
    %192 = arith.andi %186, %191 : vector<16x256xi1>
    %cst_56 = arith.constant 0.000000e+00 : f32
    %193 = vector.shape_cast %169 : vector<1x256xf32> to vector<1x256xf32>
    %194 = vector.broadcast %193 : vector<1x256xf32> to vector<16x256xf32>
    %195 = vector.broadcast %cst_56 : f32 to vector<16x256xf32>
    %196 = arith.select %192, %194, %195 : vector<16x256xi1>, vector<16x256xf32>
    %cst_57 = arith.constant 5.000000e+01 : f32
    %197 = vector.broadcast %cst_57 : f32 to vector<1x256xf32>
    %198 = arith.mulf %197, %153 : vector<1x256xf32>
    %cst_58 = arith.constant 5.000000e+01 : f32
    %199 = vector.broadcast %cst_58 : f32 to vector<1x256xf32>
    %200 = arith.mulf %199, %153 : vector<1x256xf32>
    %201 = arith.mulf %198, %200 : vector<1x256xf32>
    %cst_59 = arith.constant 0.785398185 : f32
    %202 = vector.broadcast %cst_59 : f32 to vector<1x256xf32>
    %203 = arith.mulf %201, %202 : vector<1x256xf32>
    %204 = arith.addf %182, %196 : vector<16x256xf32>
    %205 = vector.broadcast %203 : vector<1x256xf32> to vector<16x256xf32>
    %206 = arith.mulf %204, %205 : vector<16x256xf32>
    %c2_60 = arith.constant 2 : index
    %c0_61 = arith.constant 0 : index
    %c0_62 = arith.constant 0 : index
    %207 = vector.load %arg5[%c2_60, %c0_61, %c0_62] : memref<8x2x16xf32, #tpu.memory_space<vmem>>, vector<1x2x16xf32>
    %208 = vector.shape_cast %207 : vector<1x2x16xf32> to vector<2x16xf32>
    %cst_63 = arith.constant dense<0.000000e+00> : vector<2x256xf32>
    %209 = tpu.matmul %208, %206, %cst_63 {dimension_numbers = #tpu.dot_dimension_numbers<[1], [0], [0], [1], [0, 0, 1, 1], [], []>} : vector<2x16xf32>, vector<16x256xf32>, vector<2x256xf32> -> vector<2x256xf32>
    %210 = arith.addf %141, %209 : vector<2x256xf32>
    %c3 = arith.constant 3 : index
    %211 = memref.load %arg1[%c3] : memref<8xf32, #tpu.memory_space<smem>>
    %c3_64 = arith.constant 3 : index
    %212 = memref.load %arg2[%c3_64] : memref<8xf32, #tpu.memory_space<smem>>
    %213 = vector.broadcast %211 : f32 to vector<1x256xf32>
    %214 = arith.mulf %0, %213 : vector<1x256xf32>
    %215 = vector.broadcast %212 : f32 to vector<1x256xf32>
    %216 = arith.mulf %1, %215 : vector<1x256xf32>
    %217 = arith.addf %214, %216 : vector<1x256xf32>
    %cst_65 = arith.constant 5.000000e+01 : f32
    %218 = vector.broadcast %cst_65 : f32 to vector<1x256xf32>
    %219 = arith.subf %218, %217 : vector<1x256xf32>
    %cst_66 = arith.constant 9.99999997E-7 : f32
    %220 = vector.broadcast %cst_66 : f32 to vector<1x256xf32>
    %221 = arith.maximumf %219, %220 : vector<1x256xf32>
    %222 = tpu.reciprocal %221 {approx = true} : vector<1x256xf32> -> vector<1x256xf32>
    %223 = vector.broadcast %211 : f32 to vector<1x256xf32>
    %224 = arith.mulf %1, %223 : vector<1x256xf32>
    %225 = vector.broadcast %212 : f32 to vector<1x256xf32>
    %226 = arith.mulf %0, %225 : vector<1x256xf32>
    %227 = arith.subf %224, %226 : vector<1x256xf32>
    %cst_67 = arith.constant 1.000000e+02 : f32
    %228 = vector.broadcast %cst_67 : f32 to vector<1x256xf32>
    %229 = arith.mulf %227, %228 : vector<1x256xf32>
    %230 = arith.mulf %229, %222 : vector<1x256xf32>
    %cst_68 = arith.constant 0.000000e+00 : f32
    %231 = vector.broadcast %cst_68 : f32 to vector<1x256xf32>
    %232 = arith.subf %230, %231 : vector<1x256xf32>
    %cst_69 = arith.constant 1.000000e+00 : f32
    %233 = vector.broadcast %cst_69 : f32 to vector<1x256xf32>
    %234 = arith.mulf %232, %233 : vector<1x256xf32>
    %cst_70 = arith.constant 7.500000e+00 : f32
    %235 = vector.broadcast %cst_70 : f32 to vector<1x256xf32>
    %236 = arith.addf %234, %235 : vector<1x256xf32>
    %237 = math.floor %236 : vector<1x256xf32>
    %238 = arith.subf %236, %237 : vector<1x256xf32>
    %239 = arith.fptosi %237 : vector<1x256xf32> to vector<1x256xi32>
    %240 = vector.broadcast %239 : vector<1x256xi32> to vector<16x256xi32>
    %241 = arith.cmpi eq, %2, %240 : vector<16x256xi32>
    %c0_i32_71 = arith.constant 0 : i32
    %242 = vector.broadcast %c0_i32_71 : i32 to vector<1x256xi32>
    %243 = arith.cmpi sge, %239, %242 : vector<1x256xi32>
    %244 = vector.broadcast %243 : vector<1x256xi1> to vector<16x256xi1>
    %245 = arith.andi %241, %244 : vector<16x256xi1>
    %cst_72 = arith.constant 1.000000e+00 : f32
    %246 = vector.broadcast %cst_72 : f32 to vector<1x256xf32>
    %247 = arith.subf %246, %238 : vector<1x256xf32>
    %cst_73 = arith.constant 0.000000e+00 : f32
    %248 = vector.shape_cast %247 : vector<1x256xf32> to vector<1x256xf32>
    %249 = vector.broadcast %248 : vector<1x256xf32> to vector<16x256xf32>
    %250 = vector.broadcast %cst_73 : f32 to vector<16x256xf32>
    %251 = arith.select %245, %249, %250 : vector<16x256xi1>, vector<16x256xf32>
    %c1_i32_74 = arith.constant 1 : i32
    %252 = vector.broadcast %c1_i32_74 : i32 to vector<1x256xi32>
    %253 = arith.addi %239, %252 : vector<1x256xi32>
    %254 = vector.broadcast %253 : vector<1x256xi32> to vector<16x256xi32>
    %255 = arith.cmpi eq, %2, %254 : vector<16x256xi32>
    %c1_i32_75 = arith.constant 1 : i32
    %256 = vector.broadcast %c1_i32_75 : i32 to vector<1x256xi32>
    %257 = arith.addi %239, %256 : vector<1x256xi32>
    %c15_i32_76 = arith.constant 15 : i32
    %258 = vector.broadcast %c15_i32_76 : i32 to vector<1x256xi32>
    %259 = arith.cmpi sle, %257, %258 : vector<1x256xi32>
    %260 = vector.broadcast %259 : vector<1x256xi1> to vector<16x256xi1>
    %261 = arith.andi %255, %260 : vector<16x256xi1>
    %cst_77 = arith.constant 0.000000e+00 : f32
    %262 = vector.shape_cast %238 : vector<1x256xf32> to vector<1x256xf32>
    %263 = vector.broadcast %262 : vector<1x256xf32> to vector<16x256xf32>
    %264 = vector.broadcast %cst_77 : f32 to vector<16x256xf32>
    %265 = arith.select %261, %263, %264 : vector<16x256xi1>, vector<16x256xf32>
    %cst_78 = arith.constant 5.000000e+01 : f32
    %266 = vector.broadcast %cst_78 : f32 to vector<1x256xf32>
    %267 = arith.mulf %266, %222 : vector<1x256xf32>
    %cst_79 = arith.constant 5.000000e+01 : f32
    %268 = vector.broadcast %cst_79 : f32 to vector<1x256xf32>
    %269 = arith.mulf %268, %222 : vector<1x256xf32>
    %270 = arith.mulf %267, %269 : vector<1x256xf32>
    %cst_80 = arith.constant 0.785398185 : f32
    %271 = vector.broadcast %cst_80 : f32 to vector<1x256xf32>
    %272 = arith.mulf %270, %271 : vector<1x256xf32>
    %273 = arith.addf %251, %265 : vector<16x256xf32>
    %274 = vector.broadcast %272 : vector<1x256xf32> to vector<16x256xf32>
    %275 = arith.mulf %273, %274 : vector<16x256xf32>
    %c3_81 = arith.constant 3 : index
    %c0_82 = arith.constant 0 : index
    %c0_83 = arith.constant 0 : index
    %276 = vector.load %arg5[%c3_81, %c0_82, %c0_83] : memref<8x2x16xf32, #tpu.memory_space<vmem>>, vector<1x2x16xf32>
    %277 = vector.shape_cast %276 : vector<1x2x16xf32> to vector<2x16xf32>
    %cst_84 = arith.constant dense<0.000000e+00> : vector<2x256xf32>
    %278 = tpu.matmul %277, %275, %cst_84 {dimension_numbers = #tpu.dot_dimension_numbers<[1], [0], [0], [1], [0, 0, 1, 1], [], []>} : vector<2x16xf32>, vector<16x256xf32>, vector<2x256xf32> -> vector<2x256xf32>
    %279 = arith.addf %210, %278 : vector<2x256xf32>
    %c4 = arith.constant 4 : index
    %280 = memref.load %arg1[%c4] : memref<8xf32, #tpu.memory_space<smem>>
    %c4_85 = arith.constant 4 : index
    %281 = memref.load %arg2[%c4_85] : memref<8xf32, #tpu.memory_space<smem>>
    %282 = vector.broadcast %280 : f32 to vector<1x256xf32>
    %283 = arith.mulf %0, %282 : vector<1x256xf32>
    %284 = vector.broadcast %281 : f32 to vector<1x256xf32>
    %285 = arith.mulf %1, %284 : vector<1x256xf32>
    %286 = arith.addf %283, %285 : vector<1x256xf32>
    %cst_86 = arith.constant 5.000000e+01 : f32
    %287 = vector.broadcast %cst_86 : f32 to vector<1x256xf32>
    %288 = arith.subf %287, %286 : vector<1x256xf32>
    %cst_87 = arith.constant 9.99999997E-7 : f32
    %289 = vector.broadcast %cst_87 : f32 to vector<1x256xf32>
    %290 = arith.maximumf %288, %289 : vector<1x256xf32>
    %291 = tpu.reciprocal %290 {approx = true} : vector<1x256xf32> -> vector<1x256xf32>
    %292 = vector.broadcast %280 : f32 to vector<1x256xf32>
    %293 = arith.mulf %1, %292 : vector<1x256xf32>
    %294 = vector.broadcast %281 : f32 to vector<1x256xf32>
    %295 = arith.mulf %0, %294 : vector<1x256xf32>
    %296 = arith.subf %293, %295 : vector<1x256xf32>
    %cst_88 = arith.constant 1.000000e+02 : f32
    %297 = vector.broadcast %cst_88 : f32 to vector<1x256xf32>
    %298 = arith.mulf %296, %297 : vector<1x256xf32>
    %299 = arith.mulf %298, %291 : vector<1x256xf32>
    %cst_89 = arith.constant 0.000000e+00 : f32
    %300 = vector.broadcast %cst_89 : f32 to vector<1x256xf32>
    %301 = arith.subf %299, %300 : vector<1x256xf32>
    %cst_90 = arith.constant 1.000000e+00 : f32
    %302 = vector.broadcast %cst_90 : f32 to vector<1x256xf32>
    %303 = arith.mulf %301, %302 : vector<1x256xf32>
    %cst_91 = arith.constant 7.500000e+00 : f32
    %304 = vector.broadcast %cst_91 : f32 to vector<1x256xf32>
    %305 = arith.addf %303, %304 : vector<1x256xf32>
    %306 = math.floor %305 : vector<1x256xf32>
    %307 = arith.subf %305, %306 : vector<1x256xf32>
    %308 = arith.fptosi %306 : vector<1x256xf32> to vector<1x256xi32>
    %309 = vector.broadcast %308 : vector<1x256xi32> to vector<16x256xi32>
    %310 = arith.cmpi eq, %2, %309 : vector<16x256xi32>
    %c0_i32_92 = arith.constant 0 : i32
    %311 = vector.broadcast %c0_i32_92 : i32 to vector<1x256xi32>
    %312 = arith.cmpi sge, %308, %311 : vector<1x256xi32>
    %313 = vector.broadcast %312 : vector<1x256xi1> to vector<16x256xi1>
    %314 = arith.andi %310, %313 : vector<16x256xi1>
    %cst_93 = arith.constant 1.000000e+00 : f32
    %315 = vector.broadcast %cst_93 : f32 to vector<1x256xf32>
    %316 = arith.subf %315, %307 : vector<1x256xf32>
    %cst_94 = arith.constant 0.000000e+00 : f32
    %317 = vector.shape_cast %316 : vector<1x256xf32> to vector<1x256xf32>
    %318 = vector.broadcast %317 : vector<1x256xf32> to vector<16x256xf32>
    %319 = vector.broadcast %cst_94 : f32 to vector<16x256xf32>
    %320 = arith.select %314, %318, %319 : vector<16x256xi1>, vector<16x256xf32>
    %c1_i32_95 = arith.constant 1 : i32
    %321 = vector.broadcast %c1_i32_95 : i32 to vector<1x256xi32>
    %322 = arith.addi %308, %321 : vector<1x256xi32>
    %323 = vector.broadcast %322 : vector<1x256xi32> to vector<16x256xi32>
    %324 = arith.cmpi eq, %2, %323 : vector<16x256xi32>
    %c1_i32_96 = arith.constant 1 : i32
    %325 = vector.broadcast %c1_i32_96 : i32 to vector<1x256xi32>
    %326 = arith.addi %308, %325 : vector<1x256xi32>
    %c15_i32_97 = arith.constant 15 : i32
    %327 = vector.broadcast %c15_i32_97 : i32 to vector<1x256xi32>
    %328 = arith.cmpi sle, %326, %327 : vector<1x256xi32>
    %329 = vector.broadcast %328 : vector<1x256xi1> to vector<16x256xi1>
    %330 = arith.andi %324, %329 : vector<16x256xi1>
    %cst_98 = arith.constant 0.000000e+00 : f32
    %331 = vector.shape_cast %307 : vector<1x256xf32> to vector<1x256xf32>
    %332 = vector.broadcast %331 : vector<1x256xf32> to vector<16x256xf32>
    %333 = vector.broadcast %cst_98 : f32 to vector<16x256xf32>
    %334 = arith.select %330, %332, %333 : vector<16x256xi1>, vector<16x256xf32>
    %cst_99 = arith.constant 5.000000e+01 : f32
    %335 = vector.broadcast %cst_99 : f32 to vector<1x256xf32>
    %336 = arith.mulf %335, %291 : vector<1x256xf32>
    %cst_100 = arith.constant 5.000000e+01 : f32
    %337 = vector.broadcast %cst_100 : f32 to vector<1x256xf32>
    %338 = arith.mulf %337, %291 : vector<1x256xf32>
    %339 = arith.mulf %336, %338 : vector<1x256xf32>
    %cst_101 = arith.constant 0.785398185 : f32
    %340 = vector.broadcast %cst_101 : f32 to vector<1x256xf32>
    %341 = arith.mulf %339, %340 : vector<1x256xf32>
    %342 = arith.addf %320, %334 : vector<16x256xf32>
    %343 = vector.broadcast %341 : vector<1x256xf32> to vector<16x256xf32>
    %344 = arith.mulf %342, %343 : vector<16x256xf32>
    %c4_102 = arith.constant 4 : index
    %c0_103 = arith.constant 0 : index
    %c0_104 = arith.constant 0 : index
    %345 = vector.load %arg5[%c4_102, %c0_103, %c0_104] : memref<8x2x16xf32, #tpu.memory_space<vmem>>, vector<1x2x16xf32>
    %346 = vector.shape_cast %345 : vector<1x2x16xf32> to vector<2x16xf32>
    %cst_105 = arith.constant dense<0.000000e+00> : vector<2x256xf32>
    %347 = tpu.matmul %346, %344, %cst_105 {dimension_numbers = #tpu.dot_dimension_numbers<[1], [0], [0], [1], [0, 0, 1, 1], [], []>} : vector<2x16xf32>, vector<16x256xf32>, vector<2x256xf32> -> vector<2x256xf32>
    %348 = arith.addf %279, %347 : vector<2x256xf32>
    %c5 = arith.constant 5 : index
    %349 = memref.load %arg1[%c5] : memref<8xf32, #tpu.memory_space<smem>>
    %c5_106 = arith.constant 5 : index
    %350 = memref.load %arg2[%c5_106] : memref<8xf32, #tpu.memory_space<smem>>
    %351 = vector.broadcast %349 : f32 to vector<1x256xf32>
    %352 = arith.mulf %0, %351 : vector<1x256xf32>
    %353 = vector.broadcast %350 : f32 to vector<1x256xf32>
    %354 = arith.mulf %1, %353 : vector<1x256xf32>
    %355 = arith.addf %352, %354 : vector<1x256xf32>
    %cst_107 = arith.constant 5.000000e+01 : f32
    %356 = vector.broadcast %cst_107 : f32 to vector<1x256xf32>
    %357 = arith.subf %356, %355 : vector<1x256xf32>
    %cst_108 = arith.constant 9.99999997E-7 : f32
    %358 = vector.broadcast %cst_108 : f32 to vector<1x256xf32>
    %359 = arith.maximumf %357, %358 : vector<1x256xf32>
    %360 = tpu.reciprocal %359 {approx = true} : vector<1x256xf32> -> vector<1x256xf32>
    %361 = vector.broadcast %349 : f32 to vector<1x256xf32>
    %362 = arith.mulf %1, %361 : vector<1x256xf32>
    %363 = vector.broadcast %350 : f32 to vector<1x256xf32>
    %364 = arith.mulf %0, %363 : vector<1x256xf32>
    %365 = arith.subf %362, %364 : vector<1x256xf32>
    %cst_109 = arith.constant 1.000000e+02 : f32
    %366 = vector.broadcast %cst_109 : f32 to vector<1x256xf32>
    %367 = arith.mulf %365, %366 : vector<1x256xf32>
    %368 = arith.mulf %367, %360 : vector<1x256xf32>
    %cst_110 = arith.constant 0.000000e+00 : f32
    %369 = vector.broadcast %cst_110 : f32 to vector<1x256xf32>
    %370 = arith.subf %368, %369 : vector<1x256xf32>
    %cst_111 = arith.constant 1.000000e+00 : f32
    %371 = vector.broadcast %cst_111 : f32 to vector<1x256xf32>
    %372 = arith.mulf %370, %371 : vector<1x256xf32>
    %cst_112 = arith.constant 7.500000e+00 : f32
    %373 = vector.broadcast %cst_112 : f32 to vector<1x256xf32>
    %374 = arith.addf %372, %373 : vector<1x256xf32>
    %375 = math.floor %374 : vector<1x256xf32>
    %376 = arith.subf %374, %375 : vector<1x256xf32>
    %377 = arith.fptosi %375 : vector<1x256xf32> to vector<1x256xi32>
    %378 = vector.broadcast %377 : vector<1x256xi32> to vector<16x256xi32>
    %379 = arith.cmpi eq, %2, %378 : vector<16x256xi32>
    %c0_i32_113 = arith.constant 0 : i32
    %380 = vector.broadcast %c0_i32_113 : i32 to vector<1x256xi32>
    %381 = arith.cmpi sge, %377, %380 : vector<1x256xi32>
    %382 = vector.broadcast %381 : vector<1x256xi1> to vector<16x256xi1>
    %383 = arith.andi %379, %382 : vector<16x256xi1>
    %cst_114 = arith.constant 1.000000e+00 : f32
    %384 = vector.broadcast %cst_114 : f32 to vector<1x256xf32>
    %385 = arith.subf %384, %376 : vector<1x256xf32>
    %cst_115 = arith.constant 0.000000e+00 : f32
    %386 = vector.shape_cast %385 : vector<1x256xf32> to vector<1x256xf32>
    %387 = vector.broadcast %386 : vector<1x256xf32> to vector<16x256xf32>
    %388 = vector.broadcast %cst_115 : f32 to vector<16x256xf32>
    %389 = arith.select %383, %387, %388 : vector<16x256xi1>, vector<16x256xf32>
    %c1_i32_116 = arith.constant 1 : i32
    %390 = vector.broadcast %c1_i32_116 : i32 to vector<1x256xi32>
    %391 = arith.addi %377, %390 : vector<1x256xi32>
    %392 = vector.broadcast %391 : vector<1x256xi32> to vector<16x256xi32>
    %393 = arith.cmpi eq, %2, %392 : vector<16x256xi32>
    %c1_i32_117 = arith.constant 1 : i32
    %394 = vector.broadcast %c1_i32_117 : i32 to vector<1x256xi32>
    %395 = arith.addi %377, %394 : vector<1x256xi32>
    %c15_i32_118 = arith.constant 15 : i32
    %396 = vector.broadcast %c15_i32_118 : i32 to vector<1x256xi32>
    %397 = arith.cmpi sle, %395, %396 : vector<1x256xi32>
    %398 = vector.broadcast %397 : vector<1x256xi1> to vector<16x256xi1>
    %399 = arith.andi %393, %398 : vector<16x256xi1>
    %cst_119 = arith.constant 0.000000e+00 : f32
    %400 = vector.shape_cast %376 : vector<1x256xf32> to vector<1x256xf32>
    %401 = vector.broadcast %400 : vector<1x256xf32> to vector<16x256xf32>
    %402 = vector.broadcast %cst_119 : f32 to vector<16x256xf32>
    %403 = arith.select %399, %401, %402 : vector<16x256xi1>, vector<16x256xf32>
    %cst_120 = arith.constant 5.000000e+01 : f32
    %404 = vector.broadcast %cst_120 : f32 to vector<1x256xf32>
    %405 = arith.mulf %404, %360 : vector<1x256xf32>
    %cst_121 = arith.constant 5.000000e+01 : f32
    %406 = vector.broadcast %cst_121 : f32 to vector<1x256xf32>
    %407 = arith.mulf %406, %360 : vector<1x256xf32>
    %408 = arith.mulf %405, %407 : vector<1x256xf32>
    %cst_122 = arith.constant 0.785398185 : f32
    %409 = vector.broadcast %cst_122 : f32 to vector<1x256xf32>
    %410 = arith.mulf %408, %409 : vector<1x256xf32>
    %411 = arith.addf %389, %403 : vector<16x256xf32>
    %412 = vector.broadcast %410 : vector<1x256xf32> to vector<16x256xf32>
    %413 = arith.mulf %411, %412 : vector<16x256xf32>
    %c5_123 = arith.constant 5 : index
    %c0_124 = arith.constant 0 : index
    %c0_125 = arith.constant 0 : index
    %414 = vector.load %arg5[%c5_123, %c0_124, %c0_125] : memref<8x2x16xf32, #tpu.memory_space<vmem>>, vector<1x2x16xf32>
    %415 = vector.shape_cast %414 : vector<1x2x16xf32> to vector<2x16xf32>
    %cst_126 = arith.constant dense<0.000000e+00> : vector<2x256xf32>
    %416 = tpu.matmul %415, %413, %cst_126 {dimension_numbers = #tpu.dot_dimension_numbers<[1], [0], [0], [1], [0, 0, 1, 1], [], []>} : vector<2x16xf32>, vector<16x256xf32>, vector<2x256xf32> -> vector<2x256xf32>
    %417 = arith.addf %348, %416 : vector<2x256xf32>
    %c6 = arith.constant 6 : index
    %418 = memref.load %arg1[%c6] : memref<8xf32, #tpu.memory_space<smem>>
    %c6_127 = arith.constant 6 : index
    %419 = memref.load %arg2[%c6_127] : memref<8xf32, #tpu.memory_space<smem>>
    %420 = vector.broadcast %418 : f32 to vector<1x256xf32>
    %421 = arith.mulf %0, %420 : vector<1x256xf32>
    %422 = vector.broadcast %419 : f32 to vector<1x256xf32>
    %423 = arith.mulf %1, %422 : vector<1x256xf32>
    %424 = arith.addf %421, %423 : vector<1x256xf32>
    %cst_128 = arith.constant 5.000000e+01 : f32
    %425 = vector.broadcast %cst_128 : f32 to vector<1x256xf32>
    %426 = arith.subf %425, %424 : vector<1x256xf32>
    %cst_129 = arith.constant 9.99999997E-7 : f32
    %427 = vector.broadcast %cst_129 : f32 to vector<1x256xf32>
    %428 = arith.maximumf %426, %427 : vector<1x256xf32>
    %429 = tpu.reciprocal %428 {approx = true} : vector<1x256xf32> -> vector<1x256xf32>
    %430 = vector.broadcast %418 : f32 to vector<1x256xf32>
    %431 = arith.mulf %1, %430 : vector<1x256xf32>
    %432 = vector.broadcast %419 : f32 to vector<1x256xf32>
    %433 = arith.mulf %0, %432 : vector<1x256xf32>
    %434 = arith.subf %431, %433 : vector<1x256xf32>
    %cst_130 = arith.constant 1.000000e+02 : f32
    %435 = vector.broadcast %cst_130 : f32 to vector<1x256xf32>
    %436 = arith.mulf %434, %435 : vector<1x256xf32>
    %437 = arith.mulf %436, %429 : vector<1x256xf32>
    %cst_131 = arith.constant 0.000000e+00 : f32
    %438 = vector.broadcast %cst_131 : f32 to vector<1x256xf32>
    %439 = arith.subf %437, %438 : vector<1x256xf32>
    %cst_132 = arith.constant 1.000000e+00 : f32
    %440 = vector.broadcast %cst_132 : f32 to vector<1x256xf32>
    %441 = arith.mulf %439, %440 : vector<1x256xf32>
    %cst_133 = arith.constant 7.500000e+00 : f32
    %442 = vector.broadcast %cst_133 : f32 to vector<1x256xf32>
    %443 = arith.addf %441, %442 : vector<1x256xf32>
    %444 = math.floor %443 : vector<1x256xf32>
    %445 = arith.subf %443, %444 : vector<1x256xf32>
    %446 = arith.fptosi %444 : vector<1x256xf32> to vector<1x256xi32>
    %447 = vector.broadcast %446 : vector<1x256xi32> to vector<16x256xi32>
    %448 = arith.cmpi eq, %2, %447 : vector<16x256xi32>
    %c0_i32_134 = arith.constant 0 : i32
    %449 = vector.broadcast %c0_i32_134 : i32 to vector<1x256xi32>
    %450 = arith.cmpi sge, %446, %449 : vector<1x256xi32>
    %451 = vector.broadcast %450 : vector<1x256xi1> to vector<16x256xi1>
    %452 = arith.andi %448, %451 : vector<16x256xi1>
    %cst_135 = arith.constant 1.000000e+00 : f32
    %453 = vector.broadcast %cst_135 : f32 to vector<1x256xf32>
    %454 = arith.subf %453, %445 : vector<1x256xf32>
    %cst_136 = arith.constant 0.000000e+00 : f32
    %455 = vector.shape_cast %454 : vector<1x256xf32> to vector<1x256xf32>
    %456 = vector.broadcast %455 : vector<1x256xf32> to vector<16x256xf32>
    %457 = vector.broadcast %cst_136 : f32 to vector<16x256xf32>
    %458 = arith.select %452, %456, %457 : vector<16x256xi1>, vector<16x256xf32>
    %c1_i32_137 = arith.constant 1 : i32
    %459 = vector.broadcast %c1_i32_137 : i32 to vector<1x256xi32>
    %460 = arith.addi %446, %459 : vector<1x256xi32>
    %461 = vector.broadcast %460 : vector<1x256xi32> to vector<16x256xi32>
    %462 = arith.cmpi eq, %2, %461 : vector<16x256xi32>
    %c1_i32_138 = arith.constant 1 : i32
    %463 = vector.broadcast %c1_i32_138 : i32 to vector<1x256xi32>
    %464 = arith.addi %446, %463 : vector<1x256xi32>
    %c15_i32_139 = arith.constant 15 : i32
    %465 = vector.broadcast %c15_i32_139 : i32 to vector<1x256xi32>
    %466 = arith.cmpi sle, %464, %465 : vector<1x256xi32>
    %467 = vector.broadcast %466 : vector<1x256xi1> to vector<16x256xi1>
    %468 = arith.andi %462, %467 : vector<16x256xi1>
    %cst_140 = arith.constant 0.000000e+00 : f32
    %469 = vector.shape_cast %445 : vector<1x256xf32> to vector<1x256xf32>
    %470 = vector.broadcast %469 : vector<1x256xf32> to vector<16x256xf32>
    %471 = vector.broadcast %cst_140 : f32 to vector<16x256xf32>
    %472 = arith.select %468, %470, %471 : vector<16x256xi1>, vector<16x256xf32>
    %cst_141 = arith.constant 5.000000e+01 : f32
    %473 = vector.broadcast %cst_141 : f32 to vector<1x256xf32>
    %474 = arith.mulf %473, %429 : vector<1x256xf32>
    %cst_142 = arith.constant 5.000000e+01 : f32
    %475 = vector.broadcast %cst_142 : f32 to vector<1x256xf32>
    %476 = arith.mulf %475, %429 : vector<1x256xf32>
    %477 = arith.mulf %474, %476 : vector<1x256xf32>
    %cst_143 = arith.constant 0.785398185 : f32
    %478 = vector.broadcast %cst_143 : f32 to vector<1x256xf32>
    %479 = arith.mulf %477, %478 : vector<1x256xf32>
    %480 = arith.addf %458, %472 : vector<16x256xf32>
    %481 = vector.broadcast %479 : vector<1x256xf32> to vector<16x256xf32>
    %482 = arith.mulf %480, %481 : vector<16x256xf32>
    %c6_144 = arith.constant 6 : index
    %c0_145 = arith.constant 0 : index
    %c0_146 = arith.constant 0 : index
    %483 = vector.load %arg5[%c6_144, %c0_145, %c0_146] : memref<8x2x16xf32, #tpu.memory_space<vmem>>, vector<1x2x16xf32>
    %484 = vector.shape_cast %483 : vector<1x2x16xf32> to vector<2x16xf32>
    %cst_147 = arith.constant dense<0.000000e+00> : vector<2x256xf32>
    %485 = tpu.matmul %484, %482, %cst_147 {dimension_numbers = #tpu.dot_dimension_numbers<[1], [0], [0], [1], [0, 0, 1, 1], [], []>} : vector<2x16xf32>, vector<16x256xf32>, vector<2x256xf32> -> vector<2x256xf32>
    %486 = arith.addf %417, %485 : vector<2x256xf32>
    %c7 = arith.constant 7 : index
    %487 = memref.load %arg1[%c7] : memref<8xf32, #tpu.memory_space<smem>>
    %c7_148 = arith.constant 7 : index
    %488 = memref.load %arg2[%c7_148] : memref<8xf32, #tpu.memory_space<smem>>
    %489 = vector.broadcast %487 : f32 to vector<1x256xf32>
    %490 = arith.mulf %0, %489 : vector<1x256xf32>
    %491 = vector.broadcast %488 : f32 to vector<1x256xf32>
    %492 = arith.mulf %1, %491 : vector<1x256xf32>
    %493 = arith.addf %490, %492 : vector<1x256xf32>
    %cst_149 = arith.constant 5.000000e+01 : f32
    %494 = vector.broadcast %cst_149 : f32 to vector<1x256xf32>
    %495 = arith.subf %494, %493 : vector<1x256xf32>
    %cst_150 = arith.constant 9.99999997E-7 : f32
    %496 = vector.broadcast %cst_150 : f32 to vector<1x256xf32>
    %497 = arith.maximumf %495, %496 : vector<1x256xf32>
    %498 = tpu.reciprocal %497 {approx = true} : vector<1x256xf32> -> vector<1x256xf32>
    %499 = vector.broadcast %487 : f32 to vector<1x256xf32>
    %500 = arith.mulf %1, %499 : vector<1x256xf32>
    %501 = vector.broadcast %488 : f32 to vector<1x256xf32>
    %502 = arith.mulf %0, %501 : vector<1x256xf32>
    %503 = arith.subf %500, %502 : vector<1x256xf32>
    %cst_151 = arith.constant 1.000000e+02 : f32
    %504 = vector.broadcast %cst_151 : f32 to vector<1x256xf32>
    %505 = arith.mulf %503, %504 : vector<1x256xf32>
    %506 = arith.mulf %505, %498 : vector<1x256xf32>
    %cst_152 = arith.constant 0.000000e+00 : f32
    %507 = vector.broadcast %cst_152 : f32 to vector<1x256xf32>
    %508 = arith.subf %506, %507 : vector<1x256xf32>
    %cst_153 = arith.constant 1.000000e+00 : f32
    %509 = vector.broadcast %cst_153 : f32 to vector<1x256xf32>
    %510 = arith.mulf %508, %509 : vector<1x256xf32>
    %cst_154 = arith.constant 7.500000e+00 : f32
    %511 = vector.broadcast %cst_154 : f32 to vector<1x256xf32>
    %512 = arith.addf %510, %511 : vector<1x256xf32>
    %513 = math.floor %512 : vector<1x256xf32>
    %514 = arith.subf %512, %513 : vector<1x256xf32>
    %515 = arith.fptosi %513 : vector<1x256xf32> to vector<1x256xi32>
    %516 = vector.broadcast %515 : vector<1x256xi32> to vector<16x256xi32>
    %517 = arith.cmpi eq, %2, %516 : vector<16x256xi32>
    %c0_i32_155 = arith.constant 0 : i32
    %518 = vector.broadcast %c0_i32_155 : i32 to vector<1x256xi32>
    %519 = arith.cmpi sge, %515, %518 : vector<1x256xi32>
    %520 = vector.broadcast %519 : vector<1x256xi1> to vector<16x256xi1>
    %521 = arith.andi %517, %520 : vector<16x256xi1>
    %cst_156 = arith.constant 1.000000e+00 : f32
    %522 = vector.broadcast %cst_156 : f32 to vector<1x256xf32>
    %523 = arith.subf %522, %514 : vector<1x256xf32>
    %cst_157 = arith.constant 0.000000e+00 : f32
    %524 = vector.shape_cast %523 : vector<1x256xf32> to vector<1x256xf32>
    %525 = vector.broadcast %524 : vector<1x256xf32> to vector<16x256xf32>
    %526 = vector.broadcast %cst_157 : f32 to vector<16x256xf32>
    %527 = arith.select %521, %525, %526 : vector<16x256xi1>, vector<16x256xf32>
    %c1_i32_158 = arith.constant 1 : i32
    %528 = vector.broadcast %c1_i32_158 : i32 to vector<1x256xi32>
    %529 = arith.addi %515, %528 : vector<1x256xi32>
    %530 = vector.broadcast %529 : vector<1x256xi32> to vector<16x256xi32>
    %531 = arith.cmpi eq, %2, %530 : vector<16x256xi32>
    %c1_i32_159 = arith.constant 1 : i32
    %532 = vector.broadcast %c1_i32_159 : i32 to vector<1x256xi32>
    %533 = arith.addi %515, %532 : vector<1x256xi32>
    %c15_i32_160 = arith.constant 15 : i32
    %534 = vector.broadcast %c15_i32_160 : i32 to vector<1x256xi32>
    %535 = arith.cmpi sle, %533, %534 : vector<1x256xi32>
    %536 = vector.broadcast %535 : vector<1x256xi1> to vector<16x256xi1>
    %537 = arith.andi %531, %536 : vector<16x256xi1>
    %cst_161 = arith.constant 0.000000e+00 : f32
    %538 = vector.shape_cast %514 : vector<1x256xf32> to vector<1x256xf32>
    %539 = vector.broadcast %538 : vector<1x256xf32> to vector<16x256xf32>
    %540 = vector.broadcast %cst_161 : f32 to vector<16x256xf32>
    %541 = arith.select %537, %539, %540 : vector<16x256xi1>, vector<16x256xf32>
    %cst_162 = arith.constant 5.000000e+01 : f32
    %542 = vector.broadcast %cst_162 : f32 to vector<1x256xf32>
    %543 = arith.mulf %542, %498 : vector<1x256xf32>
    %cst_163 = arith.constant 5.000000e+01 : f32
    %544 = vector.broadcast %cst_163 : f32 to vector<1x256xf32>
    %545 = arith.mulf %544, %498 : vector<1x256xf32>
    %546 = arith.mulf %543, %545 : vector<1x256xf32>
    %cst_164 = arith.constant 0.785398185 : f32
    %547 = vector.broadcast %cst_164 : f32 to vector<1x256xf32>
    %548 = arith.mulf %546, %547 : vector<1x256xf32>
    %549 = arith.addf %527, %541 : vector<16x256xf32>
    %550 = vector.broadcast %548 : vector<1x256xf32> to vector<16x256xf32>
    %551 = arith.mulf %549, %550 : vector<16x256xf32>
    %c7_165 = arith.constant 7 : index
    %c0_166 = arith.constant 0 : index
    %c0_167 = arith.constant 0 : index
    %552 = vector.load %arg5[%c7_165, %c0_166, %c0_167] : memref<8x2x16xf32, #tpu.memory_space<vmem>>, vector<1x2x16xf32>
    %553 = vector.shape_cast %552 : vector<1x2x16xf32> to vector<2x16xf32>
    %cst_168 = arith.constant dense<0.000000e+00> : vector<2x256xf32>
    %554 = tpu.matmul %553, %551, %cst_168 {dimension_numbers = #tpu.dot_dimension_numbers<[1], [0], [0], [1], [0, 0, 1, 1], [], []>} : vector<2x16xf32>, vector<16x256xf32>, vector<2x256xf32> -> vector<2x256xf32>
    %555 = arith.addf %486, %554 : vector<2x256xf32>
    %c0_169 = arith.constant 0 : index
    %c0_170 = arith.constant 0 : index
    %556 = vector.load %arg6[%c0_169, %c0_170] : memref<2x256xf32, #tpu.memory_space<vmem>>, vector<2x256xf32>
    tpu.vector_store %arg6[%c0_169, %c0_170], %555 {strides = array<i32>} : memref<2x256xf32, #tpu.memory_space<vmem>>, vector<2x256xf32>,
    return
  }
  func.func @transform_0(%arg0: i32) -> i32 {
    %c0_i32 = arith.constant 0 : i32
    %c0_i32_0 = arith.constant 0 : i32
    return %c0_i32 : i32
  }
  func.func @transform_1(%arg0: i32) -> i32 {
    %c0_i32 = arith.constant 0 : i32
    %c0_i32_0 = arith.constant 0 : i32
    return %c0_i32 : i32
  }
  func.func @transform_2(%arg0: i32) -> (i32, i32) {
    %c0_i32 = arith.constant 0 : i32
    %c0_i32_0 = arith.constant 0 : i32
    return %c0_i32, %arg0 : i32, i32
  }
  func.func @transform_3(%arg0: i32) -> (i32, i32) {
    %c0_i32 = arith.constant 0 : i32
    %c0_i32_0 = arith.constant 0 : i32
    return %c0_i32, %arg0 : i32, i32
  }
  func.func @transform_4(%arg0: i32) -> (i32, i32, i32) {
    %c0_i32 = arith.constant 0 : i32
    %c0_i32_0 = arith.constant 0 : i32
    %c0_i32_1 = arith.constant 0 : i32
    %c0_i32_2 = arith.constant 0 : i32
    return %c0_i32, %c0_i32_0, %c0_i32_1 : i32, i32, i32
  }
  func.func @transform_5(%arg0: i32) -> (i32, i32) {
    %c0_i32 = arith.constant 0 : i32
    %c0_i32_0 = arith.constant 0 : i32
    return %c0_i32, %arg0 : i32, i32
  }
}

</mosaic_0001>

<bundles_post_ra>
// kernel: tpu_custom_call.1
= control target key start
LH: loop header
LB: loop body
LE: loop exit
PB: predicated region body
PF: predicated region fallthrough
CT: control target
= control target key end

     0   :  { %10 = vsyncpa [#allocation5], 0  ;;  %s2862_s0 = inlined_call_operand.hbm [shape: f32[8], index: 0, kind: input, shape index: {}]   ;;  %s2863_s1 = inlined_call_operand.vmem [shape: f32[8], index: 1, kind: input, shape index: {}]   ;;  %s2864_s2 = inlined_call_operand.vmem [shape: f32[1,256], index: 2, kind: input, shape index: {}]   ;;  %s2865_s3 = inlined_call_operand.vmem [shape: f32[1,256], index: 3, kind: input, shape index: {}]   ;;  %s2866_s4 = inlined_call_operand.hbm [shape: f32[8,2,16], index: 4, kind: input, shape index: {}]   ;;  %s2867_s5 = inlined_call_operand.hbm [shape: f32[2,256], index: 5, kind: output, shape index: {}]  }
   0x1   :  { %11 = vsyncpa [#allocation6], 0 }
   0x2   :  { %12 = vsyncpa [#allocation3], 0 }
   0x3   :  { %13 = vsyncpa [#allocation4], 0  ;;  %s28_s20 = sshll.u32 %s2863_s1, 4  ;;  %s1855_s23 = scalar_lea.hbm %s2862_s0, 16  ;;  %s29_s20 = int_to_ptr.vmem [resolvable:$true] %s28_s20 }
   0x4   :  { %p1856_p0 = scmp.ne.s32.totalorder %s2862_s0, %s1855_s23  ;;  %p1859_p1 = scmp.lt.u32.totalorder %s1855_s23, %s2862_s0 }
   0x6   :  { %p1861_p2 = pnand %p1859_p1, %p1856_p0 }
   0x8   :  { %1864 = shalt.err (!%p1861_p2)
}
   0x9   :  { %s1929_s28 = smov [#allocation2]   ;;  %s1865_s1 = scalar_lea.vmem %s29_s20, 16 }
   0xa   :  { %21 = dma.hbm_to_smem %s2862_s0, 16, %s1929_s28, [#allocation5]  }
   0xb   :  { %p1866_p3 = scmp.ne.s32.totalorder %s29_s20, %s1865_s1  ;;  %p1870_p4 = scmp.lt.s32.totalorder %s29_s20, %s29_s20 }
   0xc   :  { %p1871_p5 = scmp.lt.s32.totalorder %s1865_s1, %s1865_s1 }
   0xe   :  { %p1872_p6 = por %p1871_p5, %p1870_p4 }
  0x10   :  { %p1873_p7 = pnand %p1872_p6, %p1866_p3 }
  0x12   :  { %1876 = shalt.err (!%p1873_p7)
}
  0x13   :  { %s1930_s6 = smov [#allocation7]   ;;  %s1931_s7 = smov [#allocation8]  }
  0x14   :  { %31 = dma.vmem_to_smem %s29_s20, 16, %s1930_s6, [#allocation6]  }
  0x15   :  { %s41_s8 = sshll.u32 %s1931_s7, 4  ;;  %s1877_s11 = scalar_lea.hbm %s2866_s4, 256  ;;  %s42_s8 = int_to_ptr.vmem [resolvable:$true] %s41_s8 }
  0x16   :  { %p1878_p8 = scmp.ne.s32.totalorder %s2866_s4, %s1877_s11  ;;  %p1881_p9 = scmp.lt.u32.totalorder %s1877_s11, %s2866_s4 }
  0x18   :  { %p1883_p10 = pnand %p1881_p9, %p1878_p8 }
  0x1a   :  { %1886 = shalt.err (!%p1883_p10)
}
  0x1b   :  { %s1887_s15 = scalar_lea.vmem %s42_s8, 256  ;;  %p1892_p12 = scmp.lt.s32.totalorder %s42_s8, %s42_s8 }
  0x1c   :  { %p1888_p11 = scmp.ne.s32.totalorder %s42_s8, %s1887_s15  ;;  %p1893_p13 = scmp.lt.s32.totalorder %s1887_s15, %s1887_s15 }
  0x1e   :  { %p1894_p0 = por %p1893_p13, %p1892_p12 }
  0x20   :  { %p1895_p1 = pnand %p1894_p0, %p1888_p11 }
  0x22   :  { %1898 = shalt.err (!%p1895_p1)
}
  0x23   :  { %s1932_s16 = smov 32   ;;  %s1933_s17 = smov 2  }
  0x24   :  { %47 = dma.hbm_to_vmem [thread:$0]  %s2866_s4, 256, %s42_s8, [#allocation3], %s1932_s16, %s1932_s16, %s1933_s17  }
  0x25   :  { %1921 = dma.done.wait [#allocation5], 16  }
  0x26   :  { %1922 = vsyncadd [#allocation5], 4294967280 }
  0x27   :  { %1923 = dma.done.wait [#allocation6], 16  }
  0x28   :  { %1924 = vsyncadd [#allocation6], 4294967280 }
  0x29   :  { %1925 = dma.done.wait [#allocation3], 256  }
  0x2a   :  { %1926 = vsyncadd [#allocation3], 4294967040 }
  0x2b   :  { %57 = sfence }
  0x2c   :  { %s1744_s20 = sld [smem:[#allocation2 + $0x1]]  ;;  %v1934_v0 = vmov 0.0   ;;  %s1754_s22 = sld [smem:[#allocation2 + $0x4]]  ;;  %v60_v1 = vlaneseq  ;;  %v2003_v2 = vld [vmem:[%s2864_s2] sm:$0x3] }
  0x2d   :  { %s1745_s21 = sld [smem:[#allocation7 + $0x1]]  ;;  %392 = vmatprep.mubr.f32.mxu1 %v1934_v0  ;;  %1085 = vmatprep.mubr.f32.mxu0 %v1934_v0  ;;  %s1755_s23 = sld [smem:[#allocation7 + $0x4]]  ;;  %v2008_v3 = vld [vmem:[%s2865_s3] sm:$0x3] }
  0x2e   :  { %s1996_s24 = sld [smem:[#allocation2]]  ;;  %s2010_s29 = sld [smem:[#allocation2 + $0x5]]  ;;  %v2014_v6 = vshrl.u32 %v60_v1, 7 }
  0x2f   :  { %s1998_s4 = sld [smem:[#allocation7]]  ;;  %s2012_s30 = sld [smem:[#allocation7 + $0x5]] }
  0x30   :  { %s2020_s1 = sld [smem:[#allocation2 + $0x2]]  ;;  %v2023_v13 = vadd.s32 8, %v2014_v6  ;;  %s2035_s7 = sld [smem:[#allocation2 + $0x6]]  ;;  %v2045_v33 = vsub.s32 1, %v2014_v6  ;;  %v2069_v59 = vsub.s32 0, %v2014_v6 }
  0x31   :  { %s2027_s6 = sld [smem:[#allocation7 + $0x2]]  ;;  %s2037_s8 = sld [smem:[#allocation7 + $0x6]] }
  0x32   :  { %v195_v4 = vstv %s1744_s20  ;;  %v889_v9 = vstv %s1754_s22  ;;  %s2048_s9 = sld [smem:[#allocation2 + $0x3]]  ;;  %s2062_s11 = sld [smem:[#allocation2 + $0x7]] }
  0x33   :  { %v197_v5 = vstv %s1745_s21  ;;  %v196_v7 = vmul.f32 %v195_v4, %v2003_v2  ;;  %v891_v10 = vstv %s1755_s23  ;;  %v890_v15 = vmul.f32 %v889_v9, %v2003_v2  ;;  %s2052_s10 = sld [smem:[#allocation7 + $0x3]]  ;;  %s2064_s12 = sld [smem:[#allocation7 + $0x7]] }
  0x34   :  { %v198_v8 = vmul.f32 %v197_v5, %v2008_v3  ;;  %v65_v11 = vstv %s1996_s24  ;;  %v892_v16 = vmul.f32 %v891_v10, %v2008_v3  ;;  %v203_v17 = vmul.f32 %v195_v4, %v2008_v3 }
  0x35   :  { %v67_v12 = vstv %s1998_s4  ;;  %v204_v18 = vmul.f32 %v197_v5, %v2003_v2  ;;  %v66_v19 = vmul.f32 %v65_v11, %v2003_v2  ;;  %v897_v23 = vmul.f32 %v889_v9, %v2008_v3 }
  0x36   :  { %v199_v14 = vadd.f32 %v198_v8, %v196_v7  ;;  %v68_v20 = vmul.f32 %v67_v12, %v2008_v3  ;;  %v893_v22 = vadd.f32 %v892_v16, %v890_v15  ;;  %v898_v24 = vmul.f32 %v891_v10, %v2003_v2 }
  0x37   :  { %v73_v26 = vmul.f32 %v65_v11, %v2008_v3  ;;  %v74_v27 = vmul.f32 %v67_v12, %v2003_v2  ;;  %v1096_v28 = vstv %s2010_s29  ;;  %v1098_v32 = vstv %s2012_s30 }
  0x38   :  { %v200_v21 = vsub.f32 50.0, %v199_v14  ;;  %v69_v25 = vadd.f32 %v68_v20, %v66_v19  ;;  %v894_v30 = vsub.f32 50.0, %v893_v22  ;;  %v1097_v31 = vmul.f32 %v1096_v28, %v2003_v2 }
  0x39   :  { %v205_v34 = vsub.f32 %v203_v17, %v204_v18  ;;  %v1099_v36 = vmul.f32 %v1098_v32, %v2008_v3  ;;  %v1104_v38 = vmul.f32 %v1096_v28, %v2008_v3  ;;  %v1105_v39 = vmul.f32 %v1098_v32, %v2003_v2 }
  0x3a   :  { %v201_v29 = vmax.f32 %v200_v21, 1e-06  ;;  %v70_v35 = vsub.f32 50.0, %v69_v25  ;;  %v895_v37 = vmax.f32 %v894_v30, 1e-06  ;;  %v899_v40 = vsub.f32 %v897_v23, %v898_v24 }
  0x3b   :  { %v1100_v42 = vadd.f32 %v1099_v36, %v1097_v31  ;;  %v475_v43 = vstv %s2020_s1  ;;  %v75_v44 = vsub.f32 %v73_v26, %v74_v27  ;;  %v477_v46 = vstv %s2027_s6 }
  0x3c   :  { %1837 = vrcp.f32 %v201_v29  ;;  %v71_v41 = vmax.f32 %v70_v35, 1e-06  ;;  %v476_v45 = vmul.f32 %v475_v43, %v2003_v2  ;;  %v478_v48 = vmul.f32 %v477_v46, %v2008_v3 }
  0x3d   :  { %1839 = vrcp.f32 %v895_v37  ;;  %v1101_v47 = vsub.f32 50.0, %v1100_v42  ;;  %v483_v49 = vmul.f32 %v475_v43, %v2008_v3  ;;  %v1106_v50 = vsub.f32 %v1104_v38, %v1105_v39 }
  0x3e   :  { %1841 = vrcp.f32 %v71_v41  ;;  %v484_v51 = vmul.f32 %v477_v46, %v2003_v2  ;;  %v1303_v52 = vstv %s2035_s7  ;;  %v1305_v53 = vstv %s2037_s8 }
  0x3f   :  { %v1102_v54 = vmax.f32 %v1101_v47, 1e-06  ;;  %v479_v55 = vadd.f32 %v478_v48, %v476_v45  ;;  %v1304_v56 = vmul.f32 %v1303_v52, %v2003_v2  ;;  %v1306_v57 = vmul.f32 %v1305_v53, %v2008_v3 }
  0x40   :  { %v206_v58 = vmul.f32 100.0, %v205_v34  ;;  %v1311_v60 = vmul.f32 %v1303_v52, %v2008_v3  ;;  %v1312_v61 = vmul.f32 %v1305_v53, %v2003_v2  ;;  %v485_v63 = vsub.f32 %v483_v49, %v484_v51 }
  0x41   :  { %v480_v62 = vsub.f32 50.0, %v479_v55  ;;  %v1307_v1 = vadd.f32 %v1306_v57, %v1304_v56  ;;  %v682_v4 = vstv %s2048_s9  ;;  %v900_v5 = vmul.f32 100.0, %v899_v40 }
  0x42   :  { %v76_v7 = vmul.f32 100.0, %v75_v44  ;;  %v1313_v8 = vsub.f32 %v1311_v60, %v1312_v61  ;;  %v684_v9 = vstv %s2052_s10  ;;  %1843 = vrcp.f32 %v1102_v54 }
  0x43   :  { %v2075_v10 = vmul.f32 100.0, %v1106_v50  ;;  %v481_v11 = vmax.f32 %v480_v62, 1e-06  ;;  %v1308_v12 = vsub.f32 50.0, %v1307_v1  ;;  %v683_v15 = vmul.f32 %v682_v4, %v2003_v2 }
  0x44   :  { %v685_v16 = vmul.f32 %v684_v9, %v2008_v3  ;;  %v2080_v17 = vmul.f32 %v682_v4, %v2008_v3  ;;  %v2083_v18 = vmul.f32 %v684_v9, %v2003_v2  ;;  %v2085_v21 = vmul.f32 100.0, %v485_v63 }
  0x45   :  { %v2087_v22 = vmul.f32 100.0, %v1313_v8  ;;  %1845 = vrcp.f32 %v481_v11  ;;  %v1309_v24 = vmax.f32 %v1308_v12, 1e-06  ;;  %v1510_v25 = vstv %s2062_s11 }
  0x46   :  { %v1838_v14 = vpop.eup %1837  ;;  %v1512_v26 = vstv %s2064_s12  ;;  %v2091_v35 = vadd.f32 %v685_v16, %v683_v15  ;;  %v692_v36 = vsub.f32 %v2080_v17, %v2083_v18  ;;  %v2100_v43 = vmul.f32 %v1510_v25, %v2003_v2 }
  0x47   :  { %v207_v19 = vmul.f32 %v1838_v14, %v206_v58  ;;  %v300_v20 = vmul.f32 50.0, %v1838_v14  ;;  %v1840_v23 = vpop.eup %1839  ;;  %1847 = vrcp.f32 %v1309_v24  ;;  %v1935_v4 = vmov 0  }
  0x48   :  { %v1842_v27 = vpop.eup %1841  ;;  %v901_v30 = vmul.f32 %v1840_v23, %v900_v5  ;;  %v994_v31 = vmul.f32 50.0, %v1840_v23 }
  0x49   :  { %v208_v28 = vadd.f32 7.5, %v207_v19  ;;  %v301_v29 = vmul.f32 %v300_v20, %v300_v20  ;;  %v77_v32 = vmul.f32 %v1842_v27, %v76_v7  ;;  %v170_v34 = vmul.f32 50.0, %v1842_v27 }
  0x4a   :  { %v902_v39 = vadd.f32 7.5, %v901_v30  ;;  %v995_v40 = vmul.f32 %v994_v31, %v994_v31 }
  0x4b   :  { %v209_v37 = vfloor.f32 %v208_v28  ;;  %v302_v38 = vmul.f32 0.7853982, %v301_v29  ;;  %v2095_v41 = vadd.f32 7.5, %v77_v32  ;;  %v171_v42 = vmul.f32 %v170_v34, %v170_v34 }
  0x4c   :  { %v903_v47 = vfloor.f32 %v902_v39  ;;  %v996_v48 = vmul.f32 0.7853982, %v995_v40  ;;  %v2111_v52 = vpop.eup %1843 }
  0x4d   :  { %v210_v44 = vsub.f32 %v208_v28, %v209_v37  ;;  %v1815_v45 = vtrunc.f32 %v209_v37  ;;  %v2103_v46 = vrot.slane %v302_v38, %v2045_v33  ;;  %v2106_v49 = vrot.slane %v302_v38, %v2069_v59 }
  0x4e   :  { %v79_v50 = vfloor.f32 %v2095_v41  ;;  %v2109_v51 = vmul.f32 0.7853982, %v171_v42  ;;  %v2114_v55 = vsub.f32 %v902_v39, %v903_v47  ;;  %v1821_v56 = vtrunc.f32 %v903_v47 }
  0x4f   :  { %v1816_v53 = vcvt.f32.s32 %v1815_v45  ;;  %v240_v54 = vsub.f32 1.0, %v210_v44  ;;  %v293_v2 = vrot.slane %v210_v44, %v2045_v33  ;;  %v2117_v57 = vrot.slane %v996_v48, %v2045_v33  ;;  %v2127_v1 = vpop.eup %1845 }
  0x50   :  { %v2120_v58 = vrot.slane %v210_v44, %v2069_v59  ;;  %v2123_v60 = vrot.slane %v996_v48, %v2069_v59  ;;  %v1822_v7 = vcvt.f32.s32 %v1821_v56  ;;  %v934_v8 = vsub.f32 1.0, %v2114_v55 }
  0x51   :  { %v219_v61 = vrot.slane %v1816_v53, %v2045_v33  ;;  %vm224_vm0 = vcmp.ge.s32.totalorder %v1816_v53, 0  ;;  %v249_v62 = vrot.slane %v240_v54, %v2045_v33  ;;  %v256_v63 = vadd.s32 1, %v1816_v53  ;;  %v2148_v19 = vpop.eup %1847 }
  0x52   :  { %v225_v5 = vsel %vm224_vm0, 1, %v1935_v4  ;;  %v2133_v9 = vrot.slane %v2114_v55, %v2045_v33  ;;  %v913_v14 = vrot.slane %v1822_v7, %v2045_v33  ;;  %vm918_vm4 = vcmp.ge.s32.totalorder %v1822_v7, 0 }
  0x53   :  { %vm221_vm1 = vcmp.eq.s32.totalorder %v2014_v6, %v219_v61  ;;  %vm223_vm2 = vcmp.eq.s32.totalorder %v2023_v13, %v219_v61  ;;  %v233_v11 = vrot.slane %v225_v5, %v2045_v33  ;;  %v264_v12 = vrot.slane %v256_v63, %v2045_v33 }
  0x54   :  { %vm269_vm3 = vcmp.le.s32.totalorder %v256_v63, 15  ;;  %v2143_v15 = vrot.slane %v934_v8, %v2045_v33  ;;  %vm915_vm9 = vcmp.eq.s32.totalorder %v2014_v6, %v913_v14  ;;  %vm917_vm10 = vcmp.eq.s32.totalorder %v2023_v13, %v913_v14 }
  0x55   :  { %vm235_vm5 = vcmp.eq.s32.totalorder %v233_v11, 1  ;;  %vm266_vm6 = vcmp.eq.s32.totalorder %v2014_v6, %v264_v12  ;;  %vm268_vm7 = vcmp.eq.s32.totalorder %v2023_v13, %v264_v12  ;;  %v270_v16 = vsel %vm269_vm3, 1, %v1935_v4 }
  0x56   :  { %vm2150_vm8 = vmand %vm221_vm1, %vm235_vm5  ;;  %v278_v23 = vrot.slane %v270_v16, %v2045_v33  ;;  %v919_v24 = vsel %vm918_vm4, 1, %v1935_v4  ;;  %v950_v30 = vadd.s32 1, %v1822_v7  ;;  %v215_v31 = vrot.slane %v1816_v53, %v2069_v59 }
  0x57   :  { %vm2160_vm11 = vmand %vm223_vm2, %vm235_vm5  ;;  %v253_v28 = vsel %vm2150_vm8, %v249_v62, 0.0  ;;  %v927_v29 = vrot.slane %v919_v24, %v2045_v33  ;;  %v229_v34 = vrot.slane %v225_v5, %v2069_v59  ;;  %v245_v37 = vrot.slane %v240_v54, %v2069_v59 }
  0x58   :  { %v255_v32 = vsel %vm2160_vm11, %v249_v62, 0.0  ;;  %vm280_vm12 = vcmp.eq.s32.totalorder %v278_v23, 1  ;;  %v958_v39 = vrot.slane %v950_v30, %v2045_v33  ;;  %vm963_vm15 = vcmp.le.s32.totalorder %v950_v30, 15 }
  0x59   :  { %vm282_vm13 = vmand %vm266_vm6, %vm280_vm12  ;;  %vm2174_vm14 = vcmp.eq.s32.totalorder %v927_v29, 1  ;;  %vm220_vm0 = vcmp.eq.s32.totalorder %v2014_v6, %v215_v31  ;;  %v964_v42 = vsel %vm963_vm15, 1, %v1935_v4  ;;  %vm222_vm2 = vcmp.eq.s32.totalorder %v2023_v13, %v215_v31 }
  0x5a   :  { %vm284_vm1 = vmand %vm268_vm7, %vm280_vm12  ;;  %v297_v40 = vsel %vm282_vm13, %v293_v2, 0.0  ;;  %vm2184_vm3 = vcmp.eq.s32.totalorder %v229_v34, 1  ;;  %vm960_vm5 = vcmp.eq.s32.totalorder %v2014_v6, %v958_v39  ;;  %vm962_vm6 = vcmp.eq.s32.totalorder %v2023_v13, %v958_v39 }
  0x5b   :  { %v299_v45 = vsel %vm284_vm1, %v293_v2, 0.0  ;;  %v304_v47 = vadd.f32 %v297_v40, %v253_v28  ;;  %vm2192_vm4 = vmand %vm915_vm9, %vm2174_vm14  ;;  %v972_v56 = vrot.slane %v964_v42, %v2045_v33  ;;  %v260_v61 = vrot.slane %v256_v63, %v2069_v59 }
  0x5c   :  { %v306_v53 = vadd.f32 %v299_v45, %v255_v32  ;;  %vm2202_vm7 = vmand %vm917_vm10, %vm2174_vm14  ;;  %v947_v2 = vsel %vm2192_vm4, %v2143_v15, 0.0  ;;  %v274_v12 = vrot.slane %v270_v16, %v2069_v59  ;;  %v909_v14 = vrot.slane %v1822_v7, %v2069_v59 }
  0x5d   :  { %v319_v62 = vmul.f32 %v2103_v46, %v304_v47  ;;  %v949_v5 = vsel %vm2202_vm7, %v2143_v15, 0.0  ;;  %vm2219_vm8 = vmand %vm220_vm0, %vm2184_vm3  ;;  %vm974_vm9 = vcmp.eq.s32.totalorder %v972_v56, 1  ;;  %vm265_vm11 = vcmp.eq.s32.totalorder %v2014_v6, %v260_v61 }
  0x5e   :  { %v321_v63 = vmul.f32 %v2103_v46, %v306_v53  ;;  %vm2230_vm10 = vmand %vm222_vm2, %vm2184_vm3  ;;  %v252_v20 = vsel %vm2219_vm8, %v245_v37, 0.0  ;;  %vm267_vm13 = vcmp.eq.s32.totalorder %v2023_v13, %v260_v61  ;;  %vm279_vm14 = vcmp.eq.s32.totalorder %v274_v12, 1 }
  0x5f   :  { %vm976_vm12 = vmand %vm960_vm5, %vm974_vm9  ;;  %v254_v46 = vsel %vm2230_vm10, %v245_v37, 0.0  ;;  %vm914_vm15 = vcmp.eq.s32.totalorder %v2014_v6, %v909_v14  ;;  %vm916_vm1 = vcmp.eq.s32.totalorder %v2023_v13, %v909_v14  ;;  %v923_v23 = vrot.slane %v919_v24, %v2069_v59 }
  0x60   :  { %v1767_v7 = vpack.c.bf16 %v321_v63, %v319_v62  ;;  %vm978_vm0 = vmand %vm962_vm6, %vm974_vm9  ;;  %v991_v16 = vsel %vm976_vm12, %v2133_v9, 0.0  ;;  %v939_v29 = vrot.slane %v934_v8, %v2069_v59  ;;  %v954_v31 = vrot.slane %v950_v30, %v2069_v59  ;;  %v323_v63 = vld [vmem:[#allocation8 + $0x2] sm:$0x3] }
  0x61   :  { %v993_v27 = vsel %vm978_vm0, %v2133_v9, 0.0  ;;  %v998_v28 = vadd.f32 %v991_v16, %v947_v2  ;;  %vm281_vm2 = vmand %vm265_vm11, %vm279_vm14  ;;  %vm928_vm4 = vcmp.eq.s32.totalorder %v923_v23, 1  ;;  %v968_v24 = vrot.slane %v964_v42, %v2069_v59 }
  0x62   :  { %1768 = vmatprep.subr.bf16.mxu1 %v1767_v7  ;;  %v1000_v32 = vadd.f32 %v993_v27, %v949_v5  ;;  %vm283_vm3 = vmand %vm267_vm13, %vm279_vm14  ;;  %v296_v34 = vsel %vm281_vm2, %v2120_v58, 0.0  ;;  %vm324_vm5 = vcmask 130048   ;;  %vm959_vm7 = vcmp.eq.s32.totalorder %v2014_v6, %v954_v31 }
  0x63   :  { %v1013_v9 = vmul.f32 %v2117_v57, %v998_v28  ;;  %v298_v37 = vsel %vm283_vm3, %v2120_v58, 0.0  ;;  %v303_v38 = vadd.f32 %v296_v34, %v252_v20  ;;  %vm2261_vm6 = vmand %vm914_vm15, %vm928_vm4  ;;  %vm961_vm9 = vcmp.eq.s32.totalorder %v2023_v13, %v954_v31 }
  0x64   :  { %v1015_v30 = vmul.f32 %v2117_v57, %v1000_v32  ;;  %v305_v39 = vadd.f32 %v298_v37, %v254_v46  ;;  %vm2269_vm8 = vmand %vm916_vm1, %vm928_vm4  ;;  %v946_v58 = vsel %vm2261_vm6, %v939_v29, 0.0  ;;  %vm973_vm10 = vcmp.eq.s32.totalorder %v968_v24, 1 }
  0x65   :  { %v318_v42 = vmul.f32 %v2106_v49, %v303_v38  ;;  %v948_v44 = vsel %vm2269_vm8, %v939_v29, 0.0  ;;  %v983_v57 = vrot.slane %v2114_v55, %v2069_v59  ;;  %vm975_vm11 = vmand %vm959_vm7, %vm973_vm10  ;;  %v2285_v48 = vsub.f32 %v2095_v41, %v79_v50  ;;  %v1017_v38 = vld [vmem:[#allocation8 + $0x8] sm:$0x3] }
  0x66   :  { %v1783_v45 = vpack.c.bf16 %v1015_v30, %v1013_v9  ;;  %v320_v47 = vmul.f32 %v2106_v49, %v305_v39  ;;  %v1813_v53 = vtrunc.f32 %v79_v50  ;;  %vm977_vm12 = vmand %vm961_vm9, %vm973_vm10  ;;  %v2291_v2 = vrot.slane %v2109_v51, %v2045_v33 }
  0x67   :  { %v990_v54 = vsel %vm975_vm11, %v983_v57, 0.0  ;;  %v1108_v55 = vmul.f32 %v2111_v52, %v2075_v10  ;;  %v687_v49 = vsub.f32 50.0, %v2091_v35  ;;  %v992_v61 = vsel %vm977_vm12, %v983_v57, 0.0 }
  0x68   :  { %1784 = vmatprep.subr.bf16.mxu0 %v1783_v45  ;;  %v1769_v56 = vpack.c.bf16 %v320_v47, %v318_v42  ;;  %v997_v62 = vadd.f32 %v990_v54, %v946_v58  ;;  %v1814_v5 = vcvt.f32.s32 %v1813_v53  ;;  %v999_v11 = vadd.f32 %v992_v61, %v948_v44 }
  0x69   :  { %v110_v41 = vsub.f32 1.0, %v2285_v48  ;;  %v1109_v50 = vadd.f32 7.5, %v1108_v55  ;;  %v1201_v12 = vmul.f32 50.0, %v2111_v52  ;;  %v163_v31 = vrot.slane %v2285_v48, %v2045_v33 }
  0x6a   :  { %1770 = vmatpush1.bf16.msra.mxu1 %v1769_v56  ;;  %v1012_v14 = vmul.f32 %v2123_v60, %v997_v62  ;;  %v89_v15 = vrot.slane %v1814_v5, %v2045_v33  ;;  %vm94_vm13 = vcmp.ge.s32.totalorder %v1814_v5, 0  ;;  %v2300_v10 = vadd.s32 1, %v1814_v5 }
  0x6b   :  { %v1014_v20 = vmul.f32 %v2123_v60, %v999_v11  ;;  %v95_v46 = vsel %vm94_vm13, 1, %v1935_v4  ;;  %v119_v7 = vrot.slane %v110_v41, %v2045_v33  ;;  %v1110_v16 = vfloor.f32 %v1109_v50 }
  0x6c   :  { %vm91_vm14 = vcmp.eq.s32.totalorder %v2014_v6, %v89_v15  ;;  %vm93_vm15 = vcmp.eq.s32.totalorder %v2023_v13, %v89_v15  ;;  %v99_v52 = vrot.slane %v95_v46, %v2069_v59  ;;  %v103_v23 = vrot.slane %v95_v46, %v2045_v33 }
  0x6d   :  { %v1785_v27 = vpack.c.bf16 %v1014_v20, %v1012_v14  ;;  %1746 = vmatmul.mubr.msk.f32.vlgmr.msra.gmra.mrb[0].mxu1 %vm324_vm5, %v323_v63  ;;  %v134_v60 = vrot.slane %v2300_v10, %v2045_v33  ;;  %vm139_vm0 = vcmp.le.s32.totalorder %v2300_v10, 15  ;;  %v2315_v28 = vsub.f32 %v1109_v50, %v1110_v16 }
  0x6e   :  { %vm105_vm1 = vcmp.eq.s32.totalorder %v103_v23, 1  ;;  %v140_v29 = vsel %vm139_vm0, 1, %v1935_v4  ;;  %v1823_v32 = vtrunc.f32 %v1110_v16  ;;  %466 = vmatprep.mubr.f32.mxu1 %v1934_v0  ;;  %vm2321_vm2 = vcmp.eq.s32.totalorder %v99_v52, 1 }
  0x6f   :  { %1786 = vmatpush1.bf16.msra.mxu0 %v1785_v27  ;;  %vm2327_vm3 = vmand %vm91_vm14, %vm105_vm1  ;;  %vm136_vm4 = vcmp.eq.s32.totalorder %v2014_v6, %v134_v60  ;;  %v144_v9 = vrot.slane %v140_v29, %v2069_v59  ;;  %v148_v37 = vrot.slane %v140_v29, %v2045_v33  ;;  %vm138_vm7 = vcmp.eq.s32.totalorder %v2023_v13, %v134_v60 }
  0x70   :  { %vm2336_vm6 = vmand %vm93_vm15, %vm105_vm1  ;;  %v123_v30 = vsel %vm2327_vm3, %v119_v7, 0.0  ;;  %v1824_v39 = vcvt.f32.s32 %v1823_v32  ;;  %v1141_v40 = vsub.f32 1.0, %v2315_v28  ;;  %v2348_v42 = vrot.slane %v2315_v28, %v2045_v33 }
  0x71   :  { %v125_v58 = vsel %vm2336_vm6, %v119_v7, 0.0  ;;  %vm150_vm8 = vcmp.eq.s32.totalorder %v148_v37, 1  ;;  %v1202_v44 = vmul.f32 %v1201_v12, %v1201_v12  ;;  %vm2353_vm11 = vcmp.eq.s32.totalorder %v144_v9, 1 }
  0x72   :  { %vm152_vm9 = vmand %vm136_vm4, %vm150_vm8  ;;  %1756 = vmatmul.mubr.msk.f32.vlgmr.msra.gmra.mrb[0].mxu0 %vm324_vm5, %v1017_v38  ;;  %v1120_v57 = vrot.slane %v1824_v39, %v2045_v33  ;;  %vm1125_vm10 = vcmp.ge.s32.totalorder %v1824_v39, 0  ;;  %v1150_v45 = vrot.slane %v1141_v40, %v2045_v33  ;;  %v1157_v47 = vadd.s32 1, %v1824_v39 }
  0x73   :  { %vm154_vm12 = vmand %vm138_vm7, %vm150_vm8  ;;  %v167_v54 = vsel %vm152_vm9, %v163_v31, 0.0  ;;  %v1126_v55 = vsel %vm1125_vm10, 1, %v1935_v4  ;;  %v1203_v56 = vmul.f32 0.7853982, %v1202_v44  ;;  %v85_v61 = vrot.slane %v1814_v5, %v2069_v59  ;;  %1292 = vmatprep.mubr.f32.mxu0 %v1934_v0 }
  0x74   :  { %v169_v62 = vsel %vm154_vm12, %v163_v31, 0.0  ;;  %v174_v11 = vadd.f32 %v167_v54, %v123_v30  ;;  %vm1122_vm13 = vcmp.eq.s32.totalorder %v2014_v6, %v1120_v57  ;;  %vm1124_vm14 = vcmp.eq.s32.totalorder %v2023_v13, %v1120_v57 }
  0x75   :  { %v176_v50 = vadd.f32 %v169_v62, %v125_v58  ;;  %v1130_v12 = vrot.slane %v1126_v55, %v2069_v59  ;;  %v1134_v14 = vrot.slane %v1126_v55, %v2045_v33  ;;  %v1165_v63 = vrot.slane %v1157_v47, %v2045_v33 }
  0x76   :  { %v189_v15 = vmul.f32 %v2291_v2, %v174_v11  ;;  %vm1170_vm15 = vcmp.le.s32.totalorder %v1157_v47, 15  ;;  %v1216_v5 = vrot.slane %v1203_v56, %v2045_v33  ;;  %vm90_vm0 = vcmp.eq.s32.totalorder %v2014_v6, %v85_v61 }
  0x77   :  { %v191_v20 = vmul.f32 %v2291_v2, %v176_v50  ;;  %vm2369_vm1 = vcmp.eq.s32.totalorder %v1130_v12, 1  ;;  %vm1136_vm3 = vcmp.eq.s32.totalorder %v1134_v14, 1  ;;  %vm1167_vm4 = vcmp.eq.s32.totalorder %v2014_v6, %v1165_v63  ;;  %vm2376_vm6 = vmand %vm90_vm0, %vm2321_vm2 }
  0x78   :  { %vm2382_vm7 = vmand %vm1122_vm13, %vm1136_vm3  ;;  %vm1169_vm8 = vcmp.eq.s32.totalorder %v2023_v13, %v1165_v63  ;;  %v1171_v2 = vsel %vm1170_vm15, 1, %v1935_v4  ;;  %vm92_vm9 = vcmp.eq.s32.totalorder %v2023_v13, %v85_v61  ;;  %v115_v52 = vrot.slane %v110_v41, %v2069_v59  ;;  %v192_v41 = vld [vmem:[#allocation8] sm:$0x3] }
  0x79   :  { %v1771_v23 = vpack.c.bf16 %v191_v20, %v189_v15  ;;  %vm2394_vm10 = vmand %vm1124_vm14, %vm1136_vm3  ;;  %v1154_v60 = vsel %vm2382_vm7, %v1150_v45, 0.0  ;;  %v1175_v29 = vrot.slane %v1171_v2, %v2069_v59  ;;  %v1179_v31 = vrot.slane %v1171_v2, %v2045_v33 }
  0x7a   :  { %v1156_v32 = vsel %vm2394_vm10, %v1150_v45, 0.0  ;;  %vm2406_vm12 = vmand %vm92_vm9, %vm2321_vm2  ;;  %v122_v24 = vsel %vm2376_vm6, %v115_v52, 0.0  ;;  %v130_v9 = vrot.slane %v2300_v10, %v2069_v59  ;;  %v159_v37 = vrot.slane %v2285_v48, %v2069_v59 }
  0x7b   :  { %1772 = vmatprep.subr.bf16.mxu1 %v1771_v23  ;;  %vm2416_vm13 = vcmp.eq.s32.totalorder %v1175_v29, 1  ;;  %vm1181_vm14 = vcmp.eq.s32.totalorder %v1179_v31, 1  ;;  %v124_v34 = vsel %vm2406_vm12, %v115_v52, 0.0  ;;  %v181_v8 = vrot.slane %v2109_v51, %v2069_v59 }
  0x7c   :  { %vm1183_vm2 = vmand %vm1167_vm4, %vm1181_vm14  ;;  %vm135_vm15 = vcmp.eq.s32.totalorder %v2014_v6, %v130_v9  ;;  %vm137_vm0 = vcmp.eq.s32.totalorder %v2023_v13, %v130_v9  ;;  %v1116_v48 = vrot.slane %v1824_v39, %v2069_v59  ;;  %v1146_v10 = vrot.slane %v1141_v40, %v2069_v59 }
  0x7d   :  { %vm1185_vm3 = vmand %vm1169_vm8, %vm1181_vm14  ;;  %v1198_v30 = vsel %vm1183_vm2, %v2348_v42, 0.0  ;;  %v1161_v58 = vrot.slane %v1157_v47, %v2069_v59  ;;  %v1190_v51 = vrot.slane %v2315_v28, %v2069_v59  ;;  %v1212_v44 = vrot.slane %v1203_v56, %v2069_v59 }
  0x7e   :  { %v1200_v57 = vsel %vm1185_vm3, %v2348_v42, 0.0  ;;  %v1205_v45 = vadd.f32 %v1198_v30, %v1154_v60  ;;  %vm151_vm4 = vmand %vm135_vm15, %vm2353_vm11  ;;  %vm1121_vm6 = vcmp.eq.s32.totalorder %v2014_v6, %v1116_v48  ;;  %vm1123_vm7 = vcmp.eq.s32.totalorder %v2023_v13, %v1116_v48 }
  0x7f   :  { %v1207_v39 = vadd.f32 %v1200_v57, %v1156_v32  ;;  %vm153_vm8 = vmand %vm137_vm0, %vm2353_vm11  ;;  %v166_v40 = vsel %vm151_vm4, %v159_v37, 0.0  ;;  %vm1166_vm9 = vcmp.eq.s32.totalorder %v2014_v6, %v1161_v58  ;;  %vm1168_vm10 = vcmp.eq.s32.totalorder %v2023_v13, %v1161_v58  ;;  %v1224_v57 = vld [vmem:[#allocation8 + $0xa] sm:$0x3] }
  0x80   :  { %v1220_v28 = vmul.f32 %v1216_v5, %v1205_v45  ;;  %v168_v47 = vsel %vm153_vm8, %v159_v37, 0.0  ;;  %v173_v42 = vadd.f32 %v166_v40, %v122_v24  ;;  %vm2448_vm12 = vmand %vm1121_vm6, %vm2369_vm1  ;;  %v487_v55 = vmul.f32 %v2127_v1, %v2085_v21 }
  0x81   :  { %v1222_v56 = vmul.f32 %v1216_v5, %v1207_v39  ;;  %v175_v53 = vadd.f32 %v168_v47, %v124_v34  ;;  %vm2456_vm11 = vmand %vm1123_vm7, %vm2369_vm1  ;;  %v1153_v62 = vsel %vm2448_vm12, %v1146_v10, 0.0  ;;  %v580_v11 = vmul.f32 50.0, %v2127_v1 }
  0x82   :  { %v188_v50 = vmul.f32 %v181_v8, %v173_v42  ;;  %v1155_v12 = vsel %vm2456_vm11, %v1146_v10, 0.0  ;;  %vm1182_vm14 = vmand %vm1166_vm9, %vm2416_vm13  ;;  %v488_v21 = vadd.f32 7.5, %v487_v55  ;;  %v1315_v14 = vmul.f32 %v2148_v19, %v2087_v22 }
  0x83   :  { %v1787_v63 = vpack.c.bf16 %v1222_v56, %v1220_v28  ;;  %v190_v15 = vmul.f32 %v181_v8, %v175_v53  ;;  %vm1184_vm1 = vmand %vm1168_vm10, %vm2416_vm13  ;;  %v1197_v5 = vsel %vm1182_vm14, %v1190_v51, 0.0  ;;  %v581_v1 = vmul.f32 %v580_v11, %v580_v11 }
  0x84   :  { %v1199_v20 = vsel %vm1184_vm1, %v1190_v51, 0.0  ;;  %v1204_v46 = vadd.f32 %v1197_v5, %v1153_v62  ;;  %v489_v7 = vfloor.f32 %v488_v21  ;;  %v1316_v16 = vadd.f32 7.5, %v1315_v14  ;;  %v1853_v5 = vld [vmem:[%s2865_s3] sm:$0x3] }
  0x85   :  { %1788 = vmatprep.subr.bf16.mxu0 %v1787_v63  ;;  %v1773_v2 = vpack.c.bf16 %v190_v15, %v188_v50  ;;  %v1206_v52 = vadd.f32 %v1199_v20, %v1155_v12  ;;  %v582_v23 = vmul.f32 0.7853982, %v581_v1  ;;  %v1408_v22 = vmul.f32 50.0, %v2148_v19 }
  0x86   :  { %v1219_v27 = vmul.f32 %v1212_v44, %v1204_v46  ;;  %v2474_v60 = vsub.f32 %v488_v21, %v489_v7  ;;  %v1817_v29 = vtrunc.f32 %v489_v7  ;;  %v1317_v31 = vfloor.f32 %v1316_v16  ;;  %v1854_v7 = vld [vmem:[%s2864_s2] sm:$0x3]  ;;  %s1936_s2 = smov [#allocation9]  }
  0x87   :  { %1774 = vmatpush1.bf16.msra.mxu1 %v1773_v2  ;;  %v1221_v32 = vmul.f32 %v1212_v44, %v1206_v52  ;;  %v1409_v24 = vmul.f32 %v1408_v22, %v1408_v22  ;;  %v2478_v9 = vmax.f32 %v687_v49, 1e-06  ;;  %v2483_v37 = vmul.f32 %v1512_v26, %v2008_v3  ;;  %s1733_s3 = sshll.u32 %s1936_s2, 4  ;;  %s1734_s3 = int_to_ptr.vmem [resolvable:$true] %s1733_s3 }
  0x88   :  { %v1818_v38 = vcvt.f32.s32 %v1817_v29  ;;  %v520_v19 = vsub.f32 1.0, %v2474_v60  ;;  %v2487_v34 = vrot.slane %v582_v23, %v2045_v33  ;;  %v2490_v8 = vrot.slane %v582_v23, %v2069_v59  ;;  %s1899_s16 = scalar_lea.vmem %s1734_s3, 64  ;;  %p1904_p3 = scmp.lt.s32.totalorder %s1734_s3, %s1734_s3 }
  0x89   :  { %v1789_v48 = vpack.c.bf16 %v1221_v32, %v1219_v27  ;;  %v573_v10 = vrot.slane %v2474_v60, %v2045_v33  ;;  %v2494_v35 = vsub.f32 %v1316_v16, %v1317_v31  ;;  %v1825_v49 = vtrunc.f32 %v1317_v31  ;;  %p1900_p2 = scmp.ne.s32.totalorder %s1734_s3, %s1899_s16  ;;  %p1905_p4 = scmp.lt.s32.totalorder %s1899_s16, %s1899_s16 }
  0x8a   :  { %1747 = vmatmul.mubr.msk.f32.vlgmr.msra.gmra.mrb[0].mxu1 %vm324_vm5, %v192_v41  ;;  %v499_v3 = vrot.slane %v1818_v38, %v2045_v33  ;;  %vm504_vm13 = vcmp.ge.s32.totalorder %v1818_v38, 0  ;;  %v2498_v30 = vadd.s32 1, %v1818_v38  ;;  %v2500_v58 = vmul.f32 0.7853982, %v1409_v24 }
  0x8b   :  { %1790 = vmatpush1.bf16.msra.mxu0 %v1789_v48  ;;  %v505_v51 = vsel %vm504_vm13, 1, %v1935_v4  ;;  %v529_v44 = vrot.slane %v520_v19, %v2045_v33  ;;  %v2504_v45 = vcvt.f32.s32 %v1825_v49  ;;  %v2508_v39 = vrot.slane %v2474_v60, %v2069_v59  ;;  %671 = vmatprep.mubr.f32.mxu1 %v1934_v0  ;;  %p1906_p5 = por %p1905_p4, %p1904_p3 }
  0x8c   :  { %vm501_vm2 = vcmp.eq.s32.totalorder %v2014_v6, %v499_v3  ;;  %vm503_vm15 = vcmp.eq.s32.totalorder %v2023_v13, %v499_v3  ;;  %v509_v40 = vrot.slane %v505_v51, %v2069_v59  ;;  %v513_v28 = vrot.slane %v505_v51, %v2045_v33 }
  0x8d   :  { %v544_v47 = vrot.slane %v2498_v30, %v2045_v33  ;;  %vm549_vm0 = vcmp.le.s32.totalorder %v2498_v30, 15  ;;  %v1327_v42 = vrot.slane %v2504_v45, %v2045_v33  ;;  %vm1332_vm3 = vcmp.ge.s32.totalorder %v2504_v45, 0  ;;  %p1907_p6 = pnand %p1906_p5, %p1900_p2 }
  0x8e   :  { %vm515_vm4 = vcmp.eq.s32.totalorder %v513_v28, 1  ;;  %v550_v54 = vsel %vm549_vm0, 1, %v1935_v4  ;;  %1759 = vmatmul.mubr.msk.f32.vlgmr.msra.gmra.mrb[0].mxu0 %vm324_vm5, %v1224_v57  ;;  %v1333_v55 = vsel %vm1332_vm3, 1, %v1935_v4  ;;  %v1348_v56 = vsub.f32 1.0, %v2494_v35 }
  0x8f   :  { %vm2525_vm6 = vmand %vm501_vm2, %vm515_vm4  ;;  %vm546_vm7 = vcmp.eq.s32.totalorder %v2014_v6, %v544_v47  ;;  %v554_v61 = vrot.slane %v550_v54, %v2069_v59  ;;  %v558_v62 = vrot.slane %v550_v54, %v2045_v33  ;;  %v2534_v11 = vrot.slane %v2494_v35, %v2045_v33  ;;  %1499 = vmatprep.mubr.f32.mxu0 %v1934_v0 }
  0x90   :  { %vm2537_vm8 = vcmp.eq.s32.totalorder %v509_v40, 1  ;;  %vm2543_vm9 = vmand %vm503_vm15, %vm515_vm4  ;;  %v533_v21 = vsel %vm2525_vm6, %v529_v44, 0.0  ;;  %vm548_vm10 = vcmp.eq.s32.totalorder %v2023_v13, %v544_v47  ;;  %v1337_v14 = vrot.slane %v1333_v55, %v2069_v59 }
  0x91   :  { %vm560_vm12 = vcmp.eq.s32.totalorder %v558_v62, 1  ;;  %vm1329_vm11 = vcmp.eq.s32.totalorder %v2014_v6, %v1327_v42  ;;  %vm1331_vm14 = vcmp.eq.s32.totalorder %v2023_v13, %v1327_v42  ;;  %v1341_v63 = vrot.slane %v1333_v55, %v2045_v33 }
  0x92   :  { %v535_v15 = vsel %vm2543_vm9, %v529_v44, 0.0  ;;  %vm2556_vm1 = vcmp.eq.s32.totalorder %v554_v61, 1  ;;  %vm562_vm13 = vmand %vm546_vm7, %vm560_vm12  ;;  %v1357_v1 = vrot.slane %v1348_v56, %v2045_v33  ;;  %v1364_v20 = vadd.s32 1, %v2504_v45 }
  0x93   :  { %vm564_vm2 = vmand %vm548_vm10, %vm560_vm12  ;;  %v577_v46 = vsel %vm562_vm13, %v573_v10, 0.0  ;;  %vm2564_vm15 = vcmp.eq.s32.totalorder %v1337_v14, 1  ;;  %vm1343_vm0 = vcmp.eq.s32.totalorder %v1341_v63, 1  ;;  %v495_v16 = vrot.slane %v1818_v38, %v2069_v59 }
  0x94   :  { %v525_v2 = vrot.slane %v520_v19, %v2069_v59  ;;  %v579_v52 = vsel %vm564_vm2, %v573_v10, 0.0  ;;  %v584_v23 = vadd.f32 %v577_v46, %v533_v21  ;;  %vm2572_vm3 = vmand %vm1329_vm11, %vm1343_vm0  ;;  %v1372_v27 = vrot.slane %v1364_v20, %v2045_v33  ;;  %v1431_v19 = vld [vmem:[#allocation8 + $0xc] sm:$0x3] }
  0x95   :  { %vm1377_vm4 = vcmp.le.s32.totalorder %v1364_v20, 15  ;;  %v586_v60 = vadd.f32 %v579_v52, %v535_v15  ;;  %vm2579_vm6 = vmand %vm1331_vm14, %vm1343_vm0  ;;  %v1423_v32 = vrot.slane %v2500_v58, %v2045_v33  ;;  %vm500_vm7 = vcmp.eq.s32.totalorder %v2014_v6, %v495_v16 }
  0x96   :  { %v1378_v31 = vsel %vm1377_vm4, 1, %v1935_v4  ;;  %v599_v41 = vmul.f32 %v2487_v34, %v584_v23  ;;  %v1361_v24 = vsel %vm2572_vm3, %v1357_v1, 0.0  ;;  %v1363_v38 = vsel %vm2579_vm6, %v1357_v1, 0.0  ;;  %vm2595_vm10 = vmand %vm500_vm7, %vm2537_vm8 }
  0x97   :  { %vm1374_vm9 = vcmp.eq.s32.totalorder %v2014_v6, %v1372_v27  ;;  %v601_v48 = vmul.f32 %v2487_v34, %v586_v60  ;;  %v1382_v10 = vrot.slane %v1378_v31, %v2069_v59  ;;  %v1386_v49 = vrot.slane %v1378_v31, %v2045_v33  ;;  %v603_v60 = vld [vmem:[#allocation8 + $0x4] sm:$0x3] }
  0x98   :  { %vm502_vm12 = vcmp.eq.s32.totalorder %v2023_v13, %v495_v16  ;;  %vm1376_vm11 = vcmp.eq.s32.totalorder %v2023_v13, %v1372_v27  ;;  %v532_v51 = vsel %vm2595_vm10, %v525_v2, 0.0  ;;  %v540_v34 = vrot.slane %v2498_v30, %v2069_v59 }
  0x99   :  { %vm2606_vm14 = vmand %vm502_vm12, %vm2537_vm8  ;;  %v1323_v44 = vrot.slane %v2504_v45, %v2069_v59  ;;  %v1775_v57 = vpack.c.bf16 %v601_v48, %v599_v41  ;;  %vm2616_vm13 = vcmp.eq.s32.totalorder %v1382_v10, 1  ;;  %vm1388_vm2 = vcmp.eq.s32.totalorder %v1386_v49, 1 }
  0x9a   :  { %v1353_v28 = vrot.slane %v1348_v56, %v2069_v59  ;;  %vm1390_vm8 = vmand %vm1374_vm9, %vm1388_vm2  ;;  %v534_v47 = vsel %vm2606_vm14, %v525_v2, 0.0  ;;  %vm545_vm0 = vcmp.eq.s32.totalorder %v2014_v6, %v540_v34  ;;  %vm547_vm3 = vcmp.eq.s32.totalorder %v2023_v13, %v540_v34 }
  0x9b   :  { %vm1328_vm4 = vcmp.eq.s32.totalorder %v2014_v6, %v1323_v44  ;;  %1776 = vmatprep.subr.bf16.mxu1 %v1775_v57  ;;  %vm1392_vm6 = vmand %vm1376_vm11, %vm1388_vm2  ;;  %v1405_v30 = vsel %vm1390_vm8, %v2534_v11, 0.0  ;;  %vm1330_vm7 = vcmp.eq.s32.totalorder %v2023_v13, %v1323_v44  ;;  %v1368_v45 = vrot.slane %v1364_v20, %v2069_v59 }
  0x9c   :  { %v1397_v42 = vrot.slane %v2494_v35, %v2069_v59  ;;  %v1407_v54 = vsel %vm1392_vm6, %v2534_v11, 0.0  ;;  %v1412_v55 = vadd.f32 %v1405_v30, %v1361_v24  ;;  %vm561_vm9 = vmand %vm545_vm0, %vm2556_vm1  ;;  %1849 = vrcp.f32 %v2478_v9 }
  0x9d   :  { %v1514_v56 = vadd.f32 %v2483_v37, %v2100_v43  ;;  %v1414_v53 = vadd.f32 %v1407_v54, %v1363_v38  ;;  %vm563_vm10 = vmand %vm547_vm3, %vm2556_vm1  ;;  %v576_v61 = vsel %vm561_vm9, %v2508_v39, 0.0  ;;  %vm1373_vm12 = vcmp.eq.s32.totalorder %v2014_v6, %v1368_v45 }
  0x9e   :  { %vm1375_vm11 = vcmp.eq.s32.totalorder %v2023_v13, %v1368_v45  ;;  %v1427_v35 = vmul.f32 %v1423_v32, %v1412_v55  ;;  %v578_v62 = vsel %vm563_vm10, %v2508_v39, 0.0  ;;  %v583_v11 = vadd.f32 %v576_v61, %v532_v51  ;;  %vm2651_vm14 = vmand %vm1328_vm4, %vm2564_vm15 }
  0x9f   :  { %v1515_v9 = vsub.f32 50.0, %v1514_v56  ;;  %v1429_v37 = vmul.f32 %v1423_v32, %v1414_v53  ;;  %v585_v50 = vadd.f32 %v578_v62, %v534_v47  ;;  %vm2659_vm1 = vmand %vm1330_vm7, %vm2564_vm15  ;;  %v1360_v39 = vsel %vm2651_vm14, %v1353_v28, 0.0 }
  0xa0   :  { %v1419_v21 = vrot.slane %v2500_v58, %v2069_v59  ;;  %v598_v14 = vmul.f32 %v2490_v8, %v583_v11  ;;  %v1362_v63 = vsel %vm2659_vm1, %v1353_v28, 0.0  ;;  %vm1389_vm2 = vmand %vm1373_vm12, %vm2616_vm13  ;;  %v1518_v1 = vmul.f32 %v1853_v5, %v1510_v25 }
  0xa1   :  { %v1516_v15 = vmax.f32 %v1515_v9, 1e-06  ;;  %v1791_v20 = vpack.c.bf16 %v1429_v37, %v1427_v35  ;;  %v600_v46 = vmul.f32 %v2490_v8, %v585_v50  ;;  %vm1391_vm15 = vmand %vm1375_vm11, %vm2616_vm13  ;;  %v1404_v58 = vsel %vm1389_vm2, %v1397_v42, 0.0 }
  0xa2   :  { %v1519_v16 = vmul.f32 %v1854_v7, %v1512_v26  ;;  %v1406_v2 = vsel %vm1391_vm15, %v1397_v42, 0.0  ;;  %v1411_v52 = vadd.f32 %v1404_v58, %v1360_v39  ;;  %v693_v8 = vmul.f32 100.0, %v692_v36 }
  0xa3   :  { %1851 = vrcp.f32 %v1516_v15  ;;  %1792 = vmatprep.subr.bf16.mxu0 %v1791_v20  ;;  %v1777_v25 = vpack.c.bf16 %v600_v46, %v598_v14  ;;  %v1413_v23 = vadd.f32 %v1406_v2, %v1362_v63 }
  0xa4   :  { %v1426_v22 = vmul.f32 %v1419_v21, %v1411_v52  ;;  %v1520_v29 = vsub.f32 %v1518_v1, %v1519_v16 }
  0xa5   :  { %1778 = vmatpush1.bf16.msra.mxu1 %v1777_v25  ;;  %v1428_v27 = vmul.f32 %v1419_v21, %v1413_v23 }
  0xa6   :  { %v1850_v31 = vpop.eup %1849  ;;  %v1521_v48 = vmul.f32 100.0, %v1520_v29 }
  0xa7   :  { %v1793_v32 = vpack.c.bf16 %v1428_v27, %v1426_v22  ;;  %v694_v41 = vmul.f32 %v1850_v31, %v693_v8  ;;  %v787_v24 = vmul.f32 50.0, %v1850_v31 }
  0xa8   :  { %1750 = vmatmul.mubr.msk.f32.vlgmr.msra.gmra.mrb[0].mxu1 %vm324_vm5, %v603_v60 }
  0xa9   :  { %1794 = vmatpush1.bf16.msra.mxu0 %v1793_v32  ;;  %v695_v26 = vadd.f32 7.5, %v694_v41  ;;  %v788_v38 = vmul.f32 %v787_v24, %v787_v24  ;;  %878 = vmatprep.mubr.f32.mxu1 %v1934_v0 }
  0xab   :  { %v696_v17 = vfloor.f32 %v695_v26  ;;  %v789_v49 = vmul.f32 0.7853982, %v788_v38 }
  0xac   :  { %1762 = vmatmul.mubr.msk.f32.vlgmr.msra.gmra.mrb[0].mxu0 %vm324_vm5, %v1431_v19 }
  0xad   :  { %v1852_v18 = vpop.eup %1851  ;;  %v697_v36 = vsub.f32 %v695_v26, %v696_v17  ;;  %v1819_v10 = vtrunc.f32 %v696_v17  ;;  %1706 = vmatprep.mubr.f32.mxu0 %v1934_v0  ;;  %v802_v30 = vrot.slane %v789_v49, %v2045_v33  ;;  %v2701_v55 = vrot.slane %v789_v49, %v2069_v59 }
  0xae   :  { %v1522_v3 = vmul.f32 %v1852_v18, %v1521_v48  ;;  %v1615_v51 = vmul.f32 50.0, %v1852_v18 }
  0xaf   :  { %v1820_v34 = vcvt.f32.s32 %v1819_v10  ;;  %v727_v44 = vsub.f32 1.0, %v697_v36  ;;  %v780_v11 = vrot.slane %v697_v36, %v2045_v33  ;;  %v2724_v12 = vrot.slane %v697_v36, %v2069_v59 }
  0xb0   :  { %v1523_v57 = vadd.f32 7.5, %v1522_v3  ;;  %v1616_v40 = vmul.f32 %v1615_v51, %v1615_v51 }
  0xb1   :  { %v706_v28 = vrot.slane %v1820_v34, %v2045_v33  ;;  %vm711_vm13 = vcmp.ge.s32.totalorder %v1820_v34, 0  ;;  %v2695_v47 = vadd.s32 1, %v1820_v34  ;;  %v736_v42 = vrot.slane %v727_v44, %v2045_v33 }
  0xb2   :  { %v712_v45 = vsel %vm711_vm13, 1, %v1935_v4  ;;  %v1524_v54 = vfloor.f32 %v1523_v57  ;;  %v2706_v53 = vmul.f32 0.7853982, %v1616_v40  ;;  %v702_v43 = vrot.slane %v1820_v34, %v2069_v59 }
  0xb3   :  { %vm708_vm8 = vcmp.eq.s32.totalorder %v2014_v6, %v706_v28  ;;  %v716_v0 = vrot.slane %v712_v45, %v2069_v59  ;;  %v720_v56 = vrot.slane %v712_v45, %v2045_v33  ;;  %vm710_vm0 = vcmp.eq.s32.totalorder %v2023_v13, %v706_v28 }
  0xb4   :  { %v751_v61 = vrot.slane %v2695_v47, %v2045_v33  ;;  %vm756_vm3 = vcmp.le.s32.totalorder %v2695_v47, 15  ;;  %v1827_v35 = vtrunc.f32 %v1524_v54  ;;  %v2721_v50 = vsub.f32 %v1523_v57, %v1524_v54 }
  0xb5   :  { %vm722_vm4 = vcmp.eq.s32.totalorder %v720_v56, 1  ;;  %v757_v62 = vsel %vm756_vm3, 1, %v1935_v4  ;;  %vm2726_vm9 = vcmp.eq.s32.totalorder %v716_v0, 1  ;;  %v2737_v63 = vrot.slane %v2706_v53, %v2045_v33 }
  0xb6   :  { %vm2715_vm6 = vmand %vm708_vm8, %vm722_vm4  ;;  %vm753_vm7 = vcmp.eq.s32.totalorder %v2014_v6, %v751_v61  ;;  %v765_v37 = vrot.slane %v757_v62, %v2045_v33  ;;  %vm755_vm12 = vcmp.eq.s32.totalorder %v2023_v13, %v751_v61  ;;  %v1828_v14 = vcvt.f32.s32 %v1827_v35 }
  0xb7   :  { %vm2730_vm10 = vmand %vm710_vm0, %vm722_vm4  ;;  %v740_v15 = vsel %vm2715_vm6, %v736_v42, 0.0  ;;  %v761_v1 = vrot.slane %v757_v62, %v2069_v59  ;;  %vm707_vm2 = vcmp.eq.s32.totalorder %v2014_v6, %v702_v43  ;;  %v1555_v16 = vsub.f32 1.0, %v2721_v50 }
  0xb8   :  { %v742_v5 = vsel %vm2730_vm10, %v736_v42, 0.0  ;;  %vm767_vm11 = vcmp.eq.s32.totalorder %v765_v37, 1  ;;  %v1534_v20 = vrot.slane %v1828_v14, %v2045_v33  ;;  %vm1539_vm1 = vcmp.ge.s32.totalorder %v1828_v14, 0  ;;  %vm2757_vm0 = vmand %vm707_vm2, %vm2726_vm9 }
  0xb9   :  { %vm769_vm14 = vmand %vm753_vm7, %vm767_vm11  ;;  %v1571_v46 = vadd.s32 1, %v1828_v14  ;;  %v1540_v7 = vsel %vm1539_vm1, 1, %v1935_v4  ;;  %v1608_v2 = vrot.slane %v2721_v50, %v2045_v33  ;;  %vm709_vm13 = vcmp.eq.s32.totalorder %v2023_v13, %v702_v43 }
  0xba   :  { %vm771_vm15 = vmand %vm755_vm12, %vm767_vm11  ;;  %v784_v58 = vsel %vm769_vm14, %v780_v11, 0.0  ;;  %v732_v23 = vrot.slane %v727_v44, %v2069_v59  ;;  %vm1536_vm8 = vcmp.eq.s32.totalorder %v2014_v6, %v1534_v20  ;;  %v1548_v22 = vrot.slane %v1540_v7, %v2045_v33 }
  0xbb   :  { %v786_v52 = vsel %vm771_vm15, %v780_v11, 0.0  ;;  %v791_v25 = vadd.f32 %v784_v58, %v740_v15  ;;  %v1579_v27 = vrot.slane %v1571_v46, %v2045_v33  ;;  %vm1538_vm3 = vcmp.eq.s32.totalorder %v2023_v13, %v1534_v20  ;;  %vm2772_vm10 = vmand %vm709_vm13, %vm2726_vm9 }
  0xbc   :  { %v793_v8 = vadd.f32 %v786_v52, %v742_v5  ;;  %v1544_v31 = vrot.slane %v1540_v7, %v2069_v59  ;;  %vm1584_vm4 = vcmp.le.s32.totalorder %v1571_v46, 15  ;;  %vm2763_vm6 = vcmp.eq.s32.totalorder %v761_v1, 1  ;;  %v810_v1 = vld [vmem:[#allocation8 + $0x6] sm:$0x3] }
  0xbd   :  { %v806_v29 = vmul.f32 %v802_v30, %v791_v25  ;;  %vm1550_vm7 = vcmp.eq.s32.totalorder %v1548_v22, 1  ;;  %v1564_v24 = vrot.slane %v1555_v16, %v2045_v33  ;;  %v1585_v19 = vsel %vm1584_vm4, 1, %v1935_v4 }
  0xbe   :  { %v808_v41 = vmul.f32 %v802_v30, %v793_v8  ;;  %vm2776_vm12 = vmand %vm1536_vm8, %vm1550_vm7  ;;  %v739_v48 = vsel %vm2757_vm0, %v732_v23, 0.0  ;;  %v747_v17 = vrot.slane %v2695_v47, %v2069_v59  ;;  %v1530_v18 = vrot.slane %v1828_v14, %v2069_v59 }
  0xbf   :  { %vm2786_vm11 = vmand %vm1538_vm3, %vm1550_vm7  ;;  %vm1581_vm9 = vcmp.eq.s32.totalorder %v2014_v6, %v1579_v27  ;;  %v1589_v49 = vrot.slane %v1585_v19, %v2069_v59  ;;  %v1593_v3 = vrot.slane %v1585_v19, %v2045_v33  ;;  %vm2793_vm14 = vcmp.eq.s32.totalorder %v1544_v31, 1 }
  0xc0   :  { %v1779_v36 = vpack.c.bf16 %v808_v41, %v806_v29  ;;  %vm1583_vm1 = vcmp.eq.s32.totalorder %v2023_v13, %v1579_v27  ;;  %v741_v51 = vsel %vm2772_vm10, %v732_v23, 0.0  ;;  %vm752_vm2 = vcmp.eq.s32.totalorder %v2014_v6, %v747_v17 }
  0xc1   :  { %v1568_v34 = vsel %vm2776_vm12, %v1564_v24, 0.0  ;;  %v1570_v44 = vsel %vm2786_vm11, %v1564_v24, 0.0  ;;  %vm1595_vm15 = vcmp.eq.s32.totalorder %v1593_v3, 1  ;;  %vm754_vm13 = vcmp.eq.s32.totalorder %v2023_v13, %v747_v17  ;;  %vm768_vm8 = vmand %vm752_vm2, %vm2763_vm6 }
  0xc2   :  { %1780 = vmatprep.subr.bf16.mxu1 %v1779_v36  ;;  %vm1597_vm0 = vmand %vm1581_vm9, %vm1595_vm15  ;;  %v783_v33 = vsel %vm768_vm8, %v2724_v12, 0.0  ;;  %vm1535_vm3 = vcmp.eq.s32.totalorder %v2014_v6, %v1530_v18  ;;  %v1560_v57 = vrot.slane %v1555_v16, %v2069_v59  ;;  %v1575_v40 = vrot.slane %v1571_v46, %v2069_v59 }
  0xc3   :  { %vm2812_vm4 = vcmp.eq.s32.totalorder %v1589_v49, 1  ;;  %vm1599_vm7 = vmand %vm1583_vm1, %vm1595_vm15  ;;  %v1612_v47 = vsel %vm1597_vm0, %v1608_v2, 0.0  ;;  %v790_v30 = vadd.f32 %v783_v33, %v739_v48  ;;  %vm1537_vm10 = vcmp.eq.s32.totalorder %v2023_v13, %v1530_v18 }
  0xc4   :  { %v1614_v45 = vsel %vm1599_vm7, %v1608_v2, 0.0  ;;  %v1619_v42 = vadd.f32 %v1612_v47, %v1568_v34  ;;  %vm770_vm12 = vmand %vm754_vm13, %vm2763_vm6  ;;  %vm1580_vm11 = vcmp.eq.s32.totalorder %v2014_v6, %v1575_v40  ;;  %v1604_v54 = vrot.slane %v2721_v50, %v2069_v59 }
  0xc5   :  { %v1621_v0 = vadd.f32 %v1614_v45, %v1570_v44  ;;  %v785_v56 = vsel %vm770_vm12, %v2724_v12, 0.0  ;;  %vm2829_vm9 = vmand %vm1535_vm3, %vm2793_vm14  ;;  %vm1582_vm1 = vcmp.eq.s32.totalorder %v2023_v13, %v1575_v40  ;;  %v805_v11 = vmul.f32 %v2701_v55, %v790_v30 }
  0xc6   :  { %v1634_v35 = vmul.f32 %v2737_v63, %v1619_v42  ;;  %v792_v62 = vadd.f32 %v785_v56, %v741_v51  ;;  %vm1553_vm6 = vmand %vm1537_vm10, %vm2793_vm14  ;;  %v1567_v43 = vsel %vm2829_vm9, %v1560_v57, 0.0  ;;  %v1626_v13 = vrot.slane %v2706_v53, %v2069_v59  ;;  %v1638_v59 = vld [vmem:[#allocation8 + $0xe] sm:$0x3] }
  0xc7   :  { %v1636_v9 = vmul.f32 %v2737_v63, %v1621_v0  ;;  %v1569_v6 = vsel %vm1553_vm6, %v1560_v57, 0.0  ;;  %vm1596_vm2 = vmand %vm1580_vm11, %vm2812_vm4 }
  0xc8   :  { %v807_v37 = vmul.f32 %v2701_v55, %v792_v62  ;;  %vm1598_vm15 = vmand %vm1582_vm1, %vm2812_vm4  ;;  %v1611_v50 = vsel %vm1596_vm2, %v1604_v54, 0.0 }
  0xc9   :  { %v1795_v12 = vpack.c.bf16 %v1636_v9, %v1634_v35  ;;  %v1613_v39 = vsel %vm1598_vm15, %v1604_v54, 0.0  ;;  %v1618_v21 = vadd.f32 %v1611_v50, %v1567_v43 }
  0xca   :  { %v1781_v14 = vpack.c.bf16 %v807_v37, %v805_v11  ;;  %v1620_v15 = vadd.f32 %v1613_v39, %v1569_v6 }
  0xcb   :  { %1796 = vmatprep.subr.bf16.mxu0 %v1795_v12  ;;  %v1633_v63 = vmul.f32 %v1626_v13, %v1618_v21 }
  0xcc   :  { %1782 = vmatpush1.bf16.msra.mxu1 %v1781_v14  ;;  %v1635_v5 = vmul.f32 %v1626_v13, %v1620_v15 }
  0xce   :  { %v1797_v20 = vpack.c.bf16 %v1635_v5, %v1633_v63 }
  0xcf   :  { %1753 = vmatmul.mubr.msk.f32.vlgmr.msra.gmra.mrb[0].mxu1 %vm324_vm5, %v810_v1 }
  0xd0   :  { %1798 = vmatpush1.bf16.msra.mxu0 %v1797_v20 }
  0xd3   :  { %1765 = vmatmul.mubr.msk.f32.vlgmr.msra.gmra.mrb[0].mxu0 %vm324_vm5, %v1638_v59 }
 0x1a2   :  { %v880_v55 = vpop.f32.mrb[0].mxu1 }
 0x1a3   :  { %v882_v53 = vpop.f32.mrb[1].mxu1 }
 0x1a6   :  { %v1708_v46 = vpop.f32.mrb[0].mxu0 }
 0x1a7   :  { %v1799_v58 = vadd.f32 %v1708_v46, %v880_v55  ;;  %v1710_v7 = vpop.f32.mrb[1].mxu0 }
 0x1a8   :  { %v1800_v16 = vadd.f32 %v1710_v7, %v882_v53 }
 0x1aa   :  { %v1717_v2 = vcombine.low %v1799_v58, %v1800_v16 }
 0x1ac   :  { %1766 = vst.sshfl [vmem:[#allocation9] sm:$0x33 pattern:$0x76325410] %v1717_v2 }
 0x1ad   :  { %1910 = shalt.err (!%p1907_p6)
}
 0x1ae   :  { %s1911_s19 = scalar_lea.hbm %s2867_s5, 64 }
 0x1af   :  { %p1912_p7 = scmp.ne.s32.totalorder %s2867_s5, %s1911_s19  ;;  %p1915_p8 = scmp.lt.u32.totalorder %s1911_s19, %s2867_s5 }
 0x1b1   :  { %p1917_p9 = pnand %p1915_p8, %p1912_p7 }
 0x1b3   :  { %1920 = shalt.err (!%p1917_p9)
}
 0x1b4   :  { %1736 = dma.vmem_to_hbm [thread:$0]  %s1734_s3, 64, %s2867_s5, [#allocation4]  }
 0x1b5   :  { %1927 = dma.done.wait [#allocation4], 64  }
 0x1b6   :  { %1928 = vsyncadd [#allocation4], 4294967232 }
 0x1b7   :  { %1740 = vsyncpa [#allocation3], 1 }
 0x1b8   :  { %1741 = vsyncpa [#allocation4], 1 }
 0x1b9   :  { %1742 = vsyncpa [#allocation5], 1 }
 0x1ba   :  { %1743 = vsyncpa [#allocation6], 1 }

</bundles_post_ra>
